<compile_context>
chip_gen: v7x
topology: tpu7x:2x2x1
jax: 0.10.0
libtpu: 0.0.40
codegen_flags: <defaults>
</compile_context>

<pallas_src>
import jax
import jax.numpy as jnp
from jax.experimental import pallas as pl
from jax.experimental.pallas import tpu as pltpu

EPS = 1e-6
ALPHA = 1.0
BETA = 10.0
OHEM_RATIO = 3

# ---- OHEM histogram / refinement configuration ------------------------------
# BCE values are clamped by the PyTorch log()-clamp at -100, so per-pixel
# negative losses live in [0, 100].
_N_HIST = 32            # coarse log-spaced cumulative-count edges (in-kernel)
_HIST_LO = 1e-6
_HIST_HI = 100.0
_HIST_EDGES = (0.0,) + tuple(
    _HIST_LO * (_HIST_HI / _HIST_LO) ** (i / (_N_HIST - 2))
    for i in range(_N_HIST - 1))
_N_REFINE = 32          # candidate thresholds in the single JAX refinement pass

_N_STAT_ROWS = 8                                # 7 scalar partials + 1 pad row
_N_PARTIAL_ROWS = _N_STAT_ROWS + _N_HIST        # 40, multiple of 8

# ---- tiling configuration ----------------------------------------------------
# ~32 tile-sized f32 buffers are alive per step (7 inputs + outputs, all
# double-buffered, plus ~12 elementwise intermediates), so 192K elems * 4B * 32
# ~= 24 MiB stays inside the requested 32 MiB scoped-VMEM limit with headroom.
_TILE_ELEM_BUDGET = 192 * 1024
_MAX_TILE_ROWS = 512            # HBM roofline saturates by ~512-row tiles
_VMEM_LIMIT_BYTES = 32 * 1024 * 1024


def _round_up(x, m):
    return ((x + m - 1) // m) * m


def _pad_hw(x, h_pad, w_pad):
    """Zero-pad the last two (H, W) dims.  No-op (no copy) if already sized."""
    ph = h_pad - x.shape[-2]
    pw = w_pad - x.shape[-1]
    if ph == 0 and pw == 0:
        return x
    cfg = [(0, 0)] * (x.ndim - 2) + [(0, ph), (0, pw)]
    return jnp.pad(x, cfg)


def _tile_geometry(n, h, w):
    w_pad = _round_up(w, 128)
    th_cap = (_TILE_ELEM_BUDGET // w_pad) // 8 * 8
    th_cap = max(8, min(_MAX_TILE_ROWS, th_cap))
    num_h = -(-h // th_cap)
    if n == 1 and num_h == 1 and h > 8:
        num_h = 2                       # keep both v7x TensorCores busy
    th = _round_up(-(-h // num_h), 8)   # balanced tiles; small H padding only
    h_pad = th * num_h
    return w_pad, th, h_pad, num_h


def _db_loss_kernel(pred_ref, sgt_ref, smask_ref, tgt_ref, tmask_ref,
                    neg_loss_ref, partial_ref):
    f32 = jnp.float32

    p = pred_ref[0, 0, :, :].astype(f32)     # shrink / probability map  (TH, W)
    tp = pred_ref[0, 1, :, :].astype(f32)    # threshold map
    bp = pred_ref[0, 2, :, :].astype(f32)    # binary map
    g = sgt_ref[0, :, :].astype(f32)         # shrink gt
    m = smask_ref[0, :, :].astype(f32)       # shrink mask
    tg = tgt_ref[0, :, :].astype(f32)        # threshold gt
    tm = tmask_ref[0, :, :].astype(f32)      # threshold mask

    pos = g * m
    one_m_g = 1.0 - g
    neg = one_m_g * m

    # binary_cross_entropy (reduction='none'); PyTorch clamps log() at -100,
    # clamping before the multiply also keeps padded zero pixels NaN-free.
    log_p = jnp.maximum(jnp.log(p), -100.0)
    log_1mp = jnp.maximum(jnp.log(1.0 - p), -100.0)
    bce = -(g * log_p + one_m_g * log_1mp)

    # Per-pixel negative-loss map (read once by the OHEM refinement pass).
    neg_loss = bce * neg
    neg_loss_ref[0, :, :] = neg_loss.astype(neg_loss_ref.dtype)

    bpm = bp * m   # reused for both dice terms

    def rs(x):     # sublane-only reduce; lane/tile reduction finishes in JAX
        return jnp.sum(x, axis=0, keepdims=True)

    w = neg_loss.shape[-1]
    rows = [
        rs(pos),                      # 0: sum(gt*mask)   (pos count & dice union)
        rs(neg),                      # 1: sum((1-gt)*mask) (neg count)
        rs(bce * pos),                # 2: positive BCE loss sum
        rs(jnp.abs(tp - tg) * tm),    # 3: masked-L1 numerator
        rs(tm),                       # 4: masked-L1 denominator
        rs(bpm * g),                  # 5: dice intersection
        rs(bpm),                      # 6: dice union term 1
        jnp.zeros((1, w), f32),       # 7: pad row
    ]
    # Cumulative-from-top OHEM histogram: counts of neg_loss strictly above
    # each static log-spaced edge.  ~3 VPU ops/elem/edge — fits the VPU slack
    # of this HBM-bound kernel.
    for e in _HIST_EDGES:
        rows.append(rs(jnp.where(neg_loss > e, 1.0, 0.0)))

    # Single unmasked (40, W) store instead of forty 1-sublane masked stores.
    partial_ref[0, 0, :, :] = jnp.concatenate(rows, axis=0)


def db_loss(predictions, batch, alpha=ALPHA, beta=BETA,
            ohem_ratio=OHEM_RATIO, eps=EPS):
    N, C, H, W = predictions.shape
    assert C == 3, "train-mode DBLoss expects 3 prediction channels"
    f32 = jnp.float32

    W_pad, TH, H_pad, num_h = _tile_geometry(N, H, W)

    # Masks are zero in the padded region => all sums / top-k are unaffected.
    preds = _pad_hw(predictions, H_pad, W_pad)
    sgt = _pad_hw(batch['shrink_map'], H_pad, W_pad)
    sm = _pad_hw(batch['shrink_mask'], H_pad, W_pad)
    tgt = _pad_hw(batch['threshold_map'], H_pad, W_pad)
    tmk = _pad_hw(batch['threshold_mask'], H_pad, W_pad)

    map_block = (1, TH, W_pad)
    in_specs = [
        pl.BlockSpec((1, 3, TH, W_pad), lambda n, h: (n, 0, h, 0)),  # all 3 pred channels, one DMA
        pl.BlockSpec(map_block, lambda n, h: (n, h, 0)),             # shrink gt
        pl.BlockSpec(map_block, lambda n, h: (n, h, 0)),             # shrink mask
        pl.BlockSpec(map_block, lambda n, h: (n, h, 0)),             # threshold gt
        pl.BlockSpec(map_block, lambda n, h: (n, h, 0)),             # threshold mask
    ]
    out_specs = (
        pl.BlockSpec(map_block, lambda n, h: (n, h, 0)),                           # neg-loss map
        pl.BlockSpec((1, 1, _N_PARTIAL_ROWS, W_pad), lambda n, h: (n, h, 0, 0)),   # partials
    )
    out_shape = (
        jax.ShapeDtypeStruct((N, H_pad, W_pad), f32),
        jax.ShapeDtypeStruct((N, num_h, _N_PARTIAL_ROWS, W_pad), f32),
    )

    neg_loss, partials = pl.pallas_call(
        _db_loss_kernel,
        out_shape=out_shape,
        grid_spec=pltpu.PrefetchScalarGridSpec(
            num_scalar_prefetch=0,
            grid=(N, num_h),
            in_specs=in_specs,
            out_specs=out_specs,
        ),
        compiler_params=pltpu.CompilerParams(
            dimension_semantics=("parallel", "parallel"),
            vmem_limit_bytes=_VMEM_LIMIT_BYTES),
    )(preds, sgt, sm, tgt, tmk)

    # ---- tiny cross-lane / cross-tile reductions in JAX ----
    stats = jnp.sum(partials[:, :, :_N_STAT_ROWS, :], axis=(0, 1, 3))   # (8,)
    pos_sum = stats[0]
    pos_bce_sum = stats[2]
    l1_num, l1_den = stats[3], stats[4]
    dice_inter, dice_u1 = stats[5], stats[6]

    # Integer-exact counts (per-tile row sums are <= TH so exact in f32; the
    # cross-tile accumulation is done in int32 to stay exact past 2^24 pixels).
    pos_count = jnp.sum(jnp.round(partials[:, :, 0, :]).astype(jnp.int32))
    neg_total = jnp.sum(jnp.round(partials[:, :, 1, :]).astype(jnp.int32))
    hist_cnt = jnp.sum(
        jnp.round(partials[:, :, _N_STAT_ROWS:, :]).astype(jnp.int32),
        axis=(0, 1, 3))                                                 # (_N_HIST,)

    # ---- OHEM balanced BCE ----
    k = jnp.minimum(pos_count * ohem_ratio, neg_total)
    k_f = k.astype(f32)

    edges = jnp.asarray(_HIST_EDGES, f32)
    edges_hi = jnp.concatenate([edges[1:], jnp.asarray([_HIST_HI * 1.02], f32)])
    ok = hist_cnt >= k                         # prefix of Trues (cumulative counts)
    idx = jnp.max(jnp.where(ok, jnp.arange(_N_HIST), 0))
    lo = edges[idx]                            # largest edge with count >= k (0 if none)
    hi = edges_hi[idx]

    # Single refinement pass over neg_loss: exact counts/sums above each of
    # _N_REFINE candidates inside the coarse bin [lo, hi].  XLA fuses the
    # broadcast compares into the reductions -> one HBM read of the map.
    frac = jnp.arange(_N_REFINE, dtype=f32) / (_N_REFINE - 1)
    cands = lo + (hi - lo) * frac              # cands[0] == lo
    neg_flat = neg_loss.reshape(-1)
    above = neg_flat[:, None] > cands[None, :]                      # (P, _N_REFINE)
    cnt_c = jnp.sum(above, axis=0, dtype=jnp.int32)
    sum_c = jnp.sum(jnp.where(above, neg_flat[:, None], 0.0), axis=0)

    ok_c = cnt_c >= k
    idx_c = jnp.max(jnp.where(ok_c, jnp.arange(_N_REFINE), 0))
    thr = cands[idx_c]
    cnt_gt = cnt_c[idx_c].astype(f32)
    sum_gt = sum_c[idx_c]

    # sum(top-k) == sum_{x>thr}(x - thr) + k*thr exactly for any thr between the
    # (k+1)-th and k-th largest value; with thr one refinement step below the
    # k-th largest the residual error is <= (ties above thr) * candidate step.
    # TODO(synk): torch.topk with a data-dependent k has no static-shape Pallas
    # form; this histogram + single-pass refinement replaces the exact sort.
    neg_topk_sum = jnp.maximum(sum_gt + (k_f - cnt_gt) * thr, 0.0)

    loss_shrink = (pos_bce_sum + neg_topk_sum) / (pos_count.astype(f32) + k_f + eps)

    # ---- MaskL1 on threshold map ----
    loss_threshold = l1_num / (l1_den + eps)

    # ---- Dice on binary map (union term 2 == pos_sum, deduplicated) ----
    loss_binary = 1.0 - 2.0 * dice_inter / (dice_u1 + pos_sum + eps)

    loss_all = alpha * loss_shrink + beta * loss_threshold + loss_binary
    return dict(loss_shrink_maps=loss_shrink,
                loss_threshold_maps=loss_threshold,
                loss_binary_maps=loss_binary,
                loss=loss_all)


if __name__ == "__main__":
    key = jax.random.PRNGKey(0)
    k1, k2, k3, k4, k5 = jax.random.split(key, 5)

    N, C, H, W = 2, 3, 16, 16

    # predictions: sigmoid-squashed so BCE probabilities lie strictly in (0, 1)
    predictions = jax.nn.sigmoid(jax.random.normal(k1, (N, C, H, W), jnp.float32))

    batch = {
        'shrink_map': jax.random.bernoulli(k2, 0.3, (N, H, W)).astype(jnp.float32),
        'shrink_mask': jax.random.bernoulli(k3, 0.9, (N, H, W)).astype(jnp.float32),
        'threshold_map': jax.random.uniform(k4, (N, H, W), jnp.float32, 0.3, 0.7),
        'threshold_mask': jax.random.bernoulli(k5, 0.8, (N, H, W)).astype(jnp.float32),
    }

    losses = jax.jit(db_loss)(predictions, batch)
    losses = jax.block_until_ready(losses)
    print("KERNEL_OK")
</pallas_src>

<mosaic_0001>
module attributes {stable_mosaic.version = 11 : i64} {
  func.func @_db_loss_kernel(%arg0: i32, %arg1: i32, %arg2: memref<1x3x16x128xf32, #tpu.memory_space<vmem>>, %arg3: memref<1x16x128xf32, #tpu.memory_space<vmem>>, %arg4: memref<1x16x128xf32, #tpu.memory_space<vmem>>, %arg5: memref<1x16x128xf32, #tpu.memory_space<vmem>>, %arg6: memref<1x16x128xf32, #tpu.memory_space<vmem>>, %arg7: memref<1x16x128xf32, #tpu.memory_space<vmem>>, %arg8: memref<1x1x40x128xf32, #tpu.memory_space<vmem>>) attributes {dimension_semantics = [#tpu.dimension_semantics<parallel>, #tpu.dimension_semantics<parallel>], iteration_bounds = array<i64: 2, 1>, scalar_prefetch = 0 : i64, scratch_operands = 0 : i64, tpu.core_type = #tpu.core_type<tc>, window_params = [{transform_indices = @transform_0, window_bounds = array<i64: 1, 3, 16, 128>}, {transform_indices = @transform_1, window_bounds = array<i64: 1, 16, 128>}, {transform_indices = @transform_2, window_bounds = array<i64: 1, 16, 128>}, {transform_indices = @transform_3, window_bounds = array<i64: 1, 16, 128>}, {transform_indices = @transform_4, window_bounds = array<i64: 1, 16, 128>}, {transform_indices = @transform_5, window_bounds = array<i64: 1, 16, 128>}, {transform_indices = @transform_6, window_bounds = array<i64: 1, 1, 40, 128>}]} {
    %c0 = arith.constant 0 : index
    %c0_0 = arith.constant 0 : index
    %c0_1 = arith.constant 0 : index
    %c0_2 = arith.constant 0 : index
    %0 = vector.load %arg2[%c0, %c0_0, %c0_1, %c0_2] : memref<1x3x16x128xf32, #tpu.memory_space<vmem>>, vector<1x1x16x128xf32>
    %1 = vector.shape_cast %0 : vector<1x1x16x128xf32> to vector<16x128xf32>
    %c0_3 = arith.constant 0 : index
    %c1 = arith.constant 1 : index
    %c0_4 = arith.constant 0 : index
    %c0_5 = arith.constant 0 : index
    %2 = vector.load %arg2[%c0_3, %c1, %c0_4, %c0_5] : memref<1x3x16x128xf32, #tpu.memory_space<vmem>>, vector<1x1x16x128xf32>
    %3 = vector.shape_cast %2 : vector<1x1x16x128xf32> to vector<16x128xf32>
    %c0_6 = arith.constant 0 : index
    %c2 = arith.constant 2 : index
    %c0_7 = arith.constant 0 : index
    %c0_8 = arith.constant 0 : index
    %4 = vector.load %arg2[%c0_6, %c2, %c0_7, %c0_8] : memref<1x3x16x128xf32, #tpu.memory_space<vmem>>, vector<1x1x16x128xf32>
    %5 = vector.shape_cast %4 : vector<1x1x16x128xf32> to vector<16x128xf32>
    %c0_9 = arith.constant 0 : index
    %c0_10 = arith.constant 0 : index
    %c0_11 = arith.constant 0 : index
    %6 = vector.load %arg3[%c0_9, %c0_10, %c0_11] : memref<1x16x128xf32, #tpu.memory_space<vmem>>, vector<1x16x128xf32>
    %7 = vector.shape_cast %6 : vector<1x16x128xf32> to vector<16x128xf32>
    %c0_12 = arith.constant 0 : index
    %c0_13 = arith.constant 0 : index
    %c0_14 = arith.constant 0 : index
    %8 = vector.load %arg4[%c0_12, %c0_13, %c0_14] : memref<1x16x128xf32, #tpu.memory_space<vmem>>, vector<1x16x128xf32>
    %9 = vector.shape_cast %8 : vector<1x16x128xf32> to vector<16x128xf32>
    %c0_15 = arith.constant 0 : index
    %c0_16 = arith.constant 0 : index
    %c0_17 = arith.constant 0 : index
    %10 = vector.load %arg5[%c0_15, %c0_16, %c0_17] : memref<1x16x128xf32, #tpu.memory_space<vmem>>, vector<1x16x128xf32>
    %11 = vector.shape_cast %10 : vector<1x16x128xf32> to vector<16x128xf32>
    %c0_18 = arith.constant 0 : index
    %c0_19 = arith.constant 0 : index
    %c0_20 = arith.constant 0 : index
    %12 = vector.load %arg6[%c0_18, %c0_19, %c0_20] : memref<1x16x128xf32, #tpu.memory_space<vmem>>, vector<1x16x128xf32>
    %13 = vector.shape_cast %12 : vector<1x16x128xf32> to vector<16x128xf32>
    %14 = arith.mulf %7, %9 : vector<16x128xf32>
    %cst = arith.constant 1.000000e+00 : f32
    %15 = vector.broadcast %cst : f32 to vector<16x128xf32>
    %16 = arith.subf %15, %7 : vector<16x128xf32>
    %17 = arith.mulf %16, %9 : vector<16x128xf32>
    %18 = math.log %1 : vector<16x128xf32>
    %cst_21 = arith.constant -1.000000e+02 : f32
    %19 = vector.broadcast %cst_21 : f32 to vector<16x128xf32>
    %20 = arith.maximumf %18, %19 : vector<16x128xf32>
    %cst_22 = arith.constant 1.000000e+00 : f32
    %21 = vector.broadcast %cst_22 : f32 to vector<16x128xf32>
    %22 = arith.subf %21, %1 : vector<16x128xf32>
    %23 = math.log %22 : vector<16x128xf32>
    %cst_23 = arith.constant -1.000000e+02 : f32
    %24 = vector.broadcast %cst_23 : f32 to vector<16x128xf32>
    %25 = arith.maximumf %23, %24 : vector<16x128xf32>
    %26 = arith.mulf %7, %20 : vector<16x128xf32>
    %27 = arith.mulf %16, %25 : vector<16x128xf32>
    %28 = arith.addf %26, %27 : vector<16x128xf32>
    %cst_24 = arith.constant 0.000000e+00 : f32
    %29 = vector.broadcast %cst_24 : f32 to vector<16x128xf32>
    %30 = arith.subf %29, %28 : vector<16x128xf32>
    %31 = arith.mulf %30, %17 : vector<16x128xf32>
    %c0_25 = arith.constant 0 : index
    %c0_26 = arith.constant 0 : index
    %c0_27 = arith.constant 0 : index
    %32 = vector.load %arg7[%c0_25, %c0_26, %c0_27] : memref<1x16x128xf32, #tpu.memory_space<vmem>>, vector<1x16x128xf32>
    %33 = vector.shape_cast %32 : vector<1x16x128xf32> to vector<16x128xf32>
    %34 = vector.shape_cast %31 : vector<16x128xf32> to vector<1x16x128xf32>
    tpu.vector_store %arg7[%c0_25, %c0_26, %c0_27], %34 {strides = array<i32>} : memref<1x16x128xf32, #tpu.memory_space<vmem>>, vector<1x16x128xf32>,
    %35 = arith.mulf %5, %9 : vector<16x128xf32>
    %cst_28 = arith.constant dense<0.000000e+00> : vector<128xf32>
    %36 = vector.multi_reduction <add>, %14, %cst_28 [0] : vector<16x128xf32> to vector<128xf32>
    %37 = vector.shape_cast %36 : vector<128xf32> to vector<1x128xf32>
    %cst_29 = arith.constant dense<0.000000e+00> : vector<128xf32>
    %38 = vector.multi_reduction <add>, %17, %cst_29 [0] : vector<16x128xf32> to vector<128xf32>
    %39 = vector.shape_cast %38 : vector<128xf32> to vector<1x128xf32>
    %40 = arith.mulf %30, %14 : vector<16x128xf32>
    %cst_30 = arith.constant dense<0.000000e+00> : vector<128xf32>
    %41 = vector.multi_reduction <add>, %40, %cst_30 [0] : vector<16x128xf32> to vector<128xf32>
    %42 = vector.shape_cast %41 : vector<128xf32> to vector<1x128xf32>
    %43 = arith.subf %3, %11 : vector<16x128xf32>
    %44 = math.absf %43 : vector<16x128xf32>
    %45 = arith.mulf %44, %13 : vector<16x128xf32>
    %cst_31 = arith.constant dense<0.000000e+00> : vector<128xf32>
    %46 = vector.multi_reduction <add>, %45, %cst_31 [0] : vector<16x128xf32> to vector<128xf32>
    %47 = vector.shape_cast %46 : vector<128xf32> to vector<1x128xf32>
    %cst_32 = arith.constant dense<0.000000e+00> : vector<128xf32>
    %48 = vector.multi_reduction <add>, %13, %cst_32 [0] : vector<16x128xf32> to vector<128xf32>
    %49 = vector.shape_cast %48 : vector<128xf32> to vector<1x128xf32>
    %50 = arith.mulf %35, %7 : vector<16x128xf32>
    %cst_33 = arith.constant dense<0.000000e+00> : vector<128xf32>
    %51 = vector.multi_reduction <add>, %50, %cst_33 [0] : vector<16x128xf32> to vector<128xf32>
    %52 = vector.shape_cast %51 : vector<128xf32> to vector<1x128xf32>
    %cst_34 = arith.constant dense<0.000000e+00> : vector<128xf32>
    %53 = vector.multi_reduction <add>, %35, %cst_34 [0] : vector<16x128xf32> to vector<128xf32>
    %54 = vector.shape_cast %53 : vector<128xf32> to vector<1x128xf32>
    %cst_35 = arith.constant 0.000000e+00 : f32
    %55 = vector.broadcast %cst_35 : f32 to vector<1x128xf32>
    %cst_36 = arith.constant 0.000000e+00 : f32
    %56 = vector.broadcast %cst_36 : f32 to vector<16x128xf32>
    %57 = arith.cmpf ogt, %31, %56 : vector<16x128xf32>
    %cst_37 = arith.constant 1.000000e+00 : f32
    %cst_38 = arith.constant 0.000000e+00 : f32
    %58 = vector.broadcast %cst_37 : f32 to vector<16x128xf32>
    %59 = vector.broadcast %cst_38 : f32 to vector<16x128xf32>
    %60 = arith.select %57, %58, %59 : vector<16x128xi1>, vector<16x128xf32>
    %cst_39 = arith.constant dense<0.000000e+00> : vector<128xf32>
    %61 = vector.multi_reduction <add>, %60, %cst_39 [0] : vector<16x128xf32> to vector<128xf32>
    %62 = vector.shape_cast %61 : vector<128xf32> to vector<1x128xf32>
    %cst_40 = arith.constant 9.99999997E-7 : f32
    %63 = vector.broadcast %cst_40 : f32 to vector<16x128xf32>
    %64 = arith.cmpf ogt, %31, %63 : vector<16x128xf32>
    %cst_41 = arith.constant 1.000000e+00 : f32
    %cst_42 = arith.constant 0.000000e+00 : f32
    %65 = vector.broadcast %cst_41 : f32 to vector<16x128xf32>
    %66 = vector.broadcast %cst_42 : f32 to vector<16x128xf32>
    %67 = arith.select %64, %65, %66 : vector<16x128xi1>, vector<16x128xf32>
    %cst_43 = arith.constant dense<0.000000e+00> : vector<128xf32>
    %68 = vector.multi_reduction <add>, %67, %cst_43 [0] : vector<16x128xf32> to vector<128xf32>
    %69 = vector.shape_cast %68 : vector<128xf32> to vector<1x128xf32>
    %cst_44 = arith.constant 1.84784983E-6 : f32
    %70 = vector.broadcast %cst_44 : f32 to vector<16x128xf32>
    %71 = arith.cmpf ogt, %31, %70 : vector<16x128xf32>
    %cst_45 = arith.constant 1.000000e+00 : f32
    %cst_46 = arith.constant 0.000000e+00 : f32
    %72 = vector.broadcast %cst_45 : f32 to vector<16x128xf32>
    %73 = vector.broadcast %cst_46 : f32 to vector<16x128xf32>
    %74 = arith.select %71, %72, %73 : vector<16x128xi1>, vector<16x128xf32>
    %cst_47 = arith.constant dense<0.000000e+00> : vector<128xf32>
    %75 = vector.multi_reduction <add>, %74, %cst_47 [0] : vector<16x128xf32> to vector<128xf32>
    %76 = vector.shape_cast %75 : vector<128xf32> to vector<1x128xf32>
    %cst_48 = arith.constant 3.41454893E-6 : f32
    %77 = vector.broadcast %cst_48 : f32 to vector<16x128xf32>
    %78 = arith.cmpf ogt, %31, %77 : vector<16x128xf32>
    %cst_49 = arith.constant 1.000000e+00 : f32
    %cst_50 = arith.constant 0.000000e+00 : f32
    %79 = vector.broadcast %cst_49 : f32 to vector<16x128xf32>
    %80 = vector.broadcast %cst_50 : f32 to vector<16x128xf32>
    %81 = arith.select %78, %79, %80 : vector<16x128xi1>, vector<16x128xf32>
    %cst_51 = arith.constant dense<0.000000e+00> : vector<128xf32>
    %82 = vector.multi_reduction <add>, %81, %cst_51 [0] : vector<16x128xf32> to vector<128xf32>
    %83 = vector.shape_cast %82 : vector<128xf32> to vector<1x128xf32>
    %cst_52 = arith.constant 6.30957356E-6 : f32
    %84 = vector.broadcast %cst_52 : f32 to vector<16x128xf32>
    %85 = arith.cmpf ogt, %31, %84 : vector<16x128xf32>
    %cst_53 = arith.constant 1.000000e+00 : f32
    %cst_54 = arith.constant 0.000000e+00 : f32
    %86 = vector.broadcast %cst_53 : f32 to vector<16x128xf32>
    %87 = vector.broadcast %cst_54 : f32 to vector<16x128xf32>
    %88 = arith.select %85, %86, %87 : vector<16x128xi1>, vector<16x128xf32>
    %cst_55 = arith.constant dense<0.000000e+00> : vector<128xf32>
    %89 = vector.multi_reduction <add>, %88, %cst_55 [0] : vector<16x128xf32> to vector<128xf32>
    %90 = vector.shape_cast %89 : vector<128xf32> to vector<1x128xf32>
    %cst_56 = arith.constant 1.16591436E-5 : f32
    %91 = vector.broadcast %cst_56 : f32 to vector<16x128xf32>
    %92 = arith.cmpf ogt, %31, %91 : vector<16x128xf32>
    %cst_57 = arith.constant 1.000000e+00 : f32
    %cst_58 = arith.constant 0.000000e+00 : f32
    %93 = vector.broadcast %cst_57 : f32 to vector<16x128xf32>
    %94 = vector.broadcast %cst_58 : f32 to vector<16x128xf32>
    %95 = arith.select %92, %93, %94 : vector<16x128xi1>, vector<16x128xf32>
    %cst_59 = arith.constant dense<0.000000e+00> : vector<128xf32>
    %96 = vector.multi_reduction <add>, %95, %cst_59 [0] : vector<16x128xf32> to vector<128xf32>
    %97 = vector.shape_cast %96 : vector<128xf32> to vector<1x128xf32>
    %cst_60 = arith.constant 2.1544347E-5 : f32
    %98 = vector.broadcast %cst_60 : f32 to vector<16x128xf32>
    %99 = arith.cmpf ogt, %31, %98 : vector<16x128xf32>
    %cst_61 = arith.constant 1.000000e+00 : f32
    %cst_62 = arith.constant 0.000000e+00 : f32
    %100 = vector.broadcast %cst_61 : f32 to vector<16x128xf32>
    %101 = vector.broadcast %cst_62 : f32 to vector<16x128xf32>
    %102 = arith.select %99, %100, %101 : vector<16x128xi1>, vector<16x128xf32>
    %cst_63 = arith.constant dense<0.000000e+00> : vector<128xf32>
    %103 = vector.multi_reduction <add>, %102, %cst_63 [0] : vector<16x128xf32> to vector<128xf32>
    %104 = vector.shape_cast %103 : vector<128xf32> to vector<1x128xf32>
    %cst_64 = arith.constant 3.98107186E-5 : f32
    %105 = vector.broadcast %cst_64 : f32 to vector<16x128xf32>
    %106 = arith.cmpf ogt, %31, %105 : vector<16x128xf32>
    %cst_65 = arith.constant 1.000000e+00 : f32
    %cst_66 = arith.constant 0.000000e+00 : f32
    %107 = vector.broadcast %cst_65 : f32 to vector<16x128xf32>
    %108 = vector.broadcast %cst_66 : f32 to vector<16x128xf32>
    %109 = arith.select %106, %107, %108 : vector<16x128xi1>, vector<16x128xf32>
    %cst_67 = arith.constant dense<0.000000e+00> : vector<128xf32>
    %110 = vector.multi_reduction <add>, %109, %cst_67 [0] : vector<16x128xf32> to vector<128xf32>
    %111 = vector.shape_cast %110 : vector<128xf32> to vector<1x128xf32>
    %cst_68 = arith.constant 7.35642243E-5 : f32
    %112 = vector.broadcast %cst_68 : f32 to vector<16x128xf32>
    %113 = arith.cmpf ogt, %31, %112 : vector<16x128xf32>
    %cst_69 = arith.constant 1.000000e+00 : f32
    %cst_70 = arith.constant 0.000000e+00 : f32
    %114 = vector.broadcast %cst_69 : f32 to vector<16x128xf32>
    %115 = vector.broadcast %cst_70 : f32 to vector<16x128xf32>
    %116 = arith.select %113, %114, %115 : vector<16x128xi1>, vector<16x128xf32>
    %cst_71 = arith.constant dense<0.000000e+00> : vector<128xf32>
    %117 = vector.multi_reduction <add>, %116, %cst_71 [0] : vector<16x128xf32> to vector<128xf32>
    %118 = vector.shape_cast %117 : vector<128xf32> to vector<1x128xf32>
    %cst_72 = arith.constant 1.35935639E-4 : f32
    %119 = vector.broadcast %cst_72 : f32 to vector<16x128xf32>
    %120 = arith.cmpf ogt, %31, %119 : vector<16x128xf32>
    %cst_73 = arith.constant 1.000000e+00 : f32
    %cst_74 = arith.constant 0.000000e+00 : f32
    %121 = vector.broadcast %cst_73 : f32 to vector<16x128xf32>
    %122 = vector.broadcast %cst_74 : f32 to vector<16x128xf32>
    %123 = arith.select %120, %121, %122 : vector<16x128xi1>, vector<16x128xf32>
    %cst_75 = arith.constant dense<0.000000e+00> : vector<128xf32>
    %124 = vector.multi_reduction <add>, %123, %cst_75 [0] : vector<16x128xf32> to vector<128xf32>
    %125 = vector.shape_cast %124 : vector<128xf32> to vector<1x128xf32>
    %cst_76 = arith.constant 2.51188641E-4 : f32
    %126 = vector.broadcast %cst_76 : f32 to vector<16x128xf32>
    %127 = arith.cmpf ogt, %31, %126 : vector<16x128xf32>
    %cst_77 = arith.constant 1.000000e+00 : f32
    %cst_78 = arith.constant 0.000000e+00 : f32
    %128 = vector.broadcast %cst_77 : f32 to vector<16x128xf32>
    %129 = vector.broadcast %cst_78 : f32 to vector<16x128xf32>
    %130 = arith.select %127, %128, %129 : vector<16x128xi1>, vector<16x128xf32>
    %cst_79 = arith.constant dense<0.000000e+00> : vector<128xf32>
    %131 = vector.multi_reduction <add>, %130, %cst_79 [0] : vector<16x128xf32> to vector<128xf32>
    %132 = vector.shape_cast %131 : vector<128xf32> to vector<1x128xf32>
    %cst_80 = arith.constant 4.64158889E-4 : f32
    %133 = vector.broadcast %cst_80 : f32 to vector<16x128xf32>
    %134 = arith.cmpf ogt, %31, %133 : vector<16x128xf32>
    %cst_81 = arith.constant 1.000000e+00 : f32
    %cst_82 = arith.constant 0.000000e+00 : f32
    %135 = vector.broadcast %cst_81 : f32 to vector<16x128xf32>
    %136 = vector.broadcast %cst_82 : f32 to vector<16x128xf32>
    %137 = arith.select %134, %135, %136 : vector<16x128xi1>, vector<16x128xf32>
    %cst_83 = arith.constant dense<0.000000e+00> : vector<128xf32>
    %138 = vector.multi_reduction <add>, %137, %cst_83 [0] : vector<16x128xf32> to vector<128xf32>
    %139 = vector.shape_cast %138 : vector<128xf32> to vector<1x128xf32>
    %cst_84 = arith.constant 8.57695879E-4 : f32
    %140 = vector.broadcast %cst_84 : f32 to vector<16x128xf32>
    %141 = arith.cmpf ogt, %31, %140 : vector<16x128xf32>
    %cst_85 = arith.constant 1.000000e+00 : f32
    %cst_86 = arith.constant 0.000000e+00 : f32
    %142 = vector.broadcast %cst_85 : f32 to vector<16x128xf32>
    %143 = vector.broadcast %cst_86 : f32 to vector<16x128xf32>
    %144 = arith.select %141, %142, %143 : vector<16x128xi1>, vector<16x128xf32>
    %cst_87 = arith.constant dense<0.000000e+00> : vector<128xf32>
    %145 = vector.multi_reduction <add>, %144, %cst_87 [0] : vector<16x128xf32> to vector<128xf32>
    %146 = vector.shape_cast %145 : vector<128xf32> to vector<1x128xf32>
    %cst_88 = arith.constant 0.00158489321 : f32
    %147 = vector.broadcast %cst_88 : f32 to vector<16x128xf32>
    %148 = arith.cmpf ogt, %31, %147 : vector<16x128xf32>
    %cst_89 = arith.constant 1.000000e+00 : f32
    %cst_90 = arith.constant 0.000000e+00 : f32
    %149 = vector.broadcast %cst_89 : f32 to vector<16x128xf32>
    %150 = vector.broadcast %cst_90 : f32 to vector<16x128xf32>
    %151 = arith.select %148, %149, %150 : vector<16x128xi1>, vector<16x128xf32>
    %cst_91 = arith.constant dense<0.000000e+00> : vector<128xf32>
    %152 = vector.multi_reduction <add>, %151, %cst_91 [0] : vector<16x128xf32> to vector<128xf32>
    %153 = vector.shape_cast %152 : vector<128xf32> to vector<1x128xf32>
    %cst_92 = arith.constant 0.00292864465 : f32
    %154 = vector.broadcast %cst_92 : f32 to vector<16x128xf32>
    %155 = arith.cmpf ogt, %31, %154 : vector<16x128xf32>
    %cst_93 = arith.constant 1.000000e+00 : f32
    %cst_94 = arith.constant 0.000000e+00 : f32
    %156 = vector.broadcast %cst_93 : f32 to vector<16x128xf32>
    %157 = vector.broadcast %cst_94 : f32 to vector<16x128xf32>
    %158 = arith.select %155, %156, %157 : vector<16x128xi1>, vector<16x128xf32>
    %cst_95 = arith.constant dense<0.000000e+00> : vector<128xf32>
    %159 = vector.multi_reduction <add>, %158, %cst_95 [0] : vector<16x128xf32> to vector<128xf32>
    %160 = vector.shape_cast %159 : vector<128xf32> to vector<1x128xf32>
    %cst_96 = arith.constant 0.00541169522 : f32
    %161 = vector.broadcast %cst_96 : f32 to vector<16x128xf32>
    %162 = arith.cmpf ogt, %31, %161 : vector<16x128xf32>
    %cst_97 = arith.constant 1.000000e+00 : f32
    %cst_98 = arith.constant 0.000000e+00 : f32
    %163 = vector.broadcast %cst_97 : f32 to vector<16x128xf32>
    %164 = vector.broadcast %cst_98 : f32 to vector<16x128xf32>
    %165 = arith.select %162, %163, %164 : vector<16x128xi1>, vector<16x128xf32>
    %cst_99 = arith.constant dense<0.000000e+00> : vector<128xf32>
    %166 = vector.multi_reduction <add>, %165, %cst_99 [0] : vector<16x128xf32> to vector<128xf32>
    %167 = vector.shape_cast %166 : vector<128xf32> to vector<1x128xf32>
    %cst_100 = arith.constant 0.00999999977 : f32
    %168 = vector.broadcast %cst_100 : f32 to vector<16x128xf32>
    %169 = arith.cmpf ogt, %31, %168 : vector<16x128xf32>
    %cst_101 = arith.constant 1.000000e+00 : f32
    %cst_102 = arith.constant 0.000000e+00 : f32
    %170 = vector.broadcast %cst_101 : f32 to vector<16x128xf32>
    %171 = vector.broadcast %cst_102 : f32 to vector<16x128xf32>
    %172 = arith.select %169, %170, %171 : vector<16x128xi1>, vector<16x128xf32>
    %cst_103 = arith.constant dense<0.000000e+00> : vector<128xf32>
    %173 = vector.multi_reduction <add>, %172, %cst_103 [0] : vector<16x128xf32> to vector<128xf32>
    %174 = vector.shape_cast %173 : vector<128xf32> to vector<1x128xf32>
    %cst_104 = arith.constant 0.0184784979 : f32
    %175 = vector.broadcast %cst_104 : f32 to vector<16x128xf32>
    %176 = arith.cmpf ogt, %31, %175 : vector<16x128xf32>
    %cst_105 = arith.constant 1.000000e+00 : f32
    %cst_106 = arith.constant 0.000000e+00 : f32
    %177 = vector.broadcast %cst_105 : f32 to vector<16x128xf32>
    %178 = vector.broadcast %cst_106 : f32 to vector<16x128xf32>
    %179 = arith.select %176, %177, %178 : vector<16x128xi1>, vector<16x128xf32>
    %cst_107 = arith.constant dense<0.000000e+00> : vector<128xf32>
    %180 = vector.multi_reduction <add>, %179, %cst_107 [0] : vector<16x128xf32> to vector<128xf32>
    %181 = vector.shape_cast %180 : vector<128xf32> to vector<1x128xf32>
    %cst_108 = arith.constant 0.0341454893 : f32
    %182 = vector.broadcast %cst_108 : f32 to vector<16x128xf32>
    %183 = arith.cmpf ogt, %31, %182 : vector<16x128xf32>
    %cst_109 = arith.constant 1.000000e+00 : f32
    %cst_110 = arith.constant 0.000000e+00 : f32
    %184 = vector.broadcast %cst_109 : f32 to vector<16x128xf32>
    %185 = vector.broadcast %cst_110 : f32 to vector<16x128xf32>
    %186 = arith.select %183, %184, %185 : vector<16x128xi1>, vector<16x128xf32>
    %cst_111 = arith.constant dense<0.000000e+00> : vector<128xf32>
    %187 = vector.multi_reduction <add>, %186, %cst_111 [0] : vector<16x128xf32> to vector<128xf32>
    %188 = vector.shape_cast %187 : vector<128xf32> to vector<1x128xf32>
    %cst_112 = arith.constant 0.0630957335 : f32
    %189 = vector.broadcast %cst_112 : f32 to vector<16x128xf32>
    %190 = arith.cmpf ogt, %31, %189 : vector<16x128xf32>
    %cst_113 = arith.constant 1.000000e+00 : f32
    %cst_114 = arith.constant 0.000000e+00 : f32
    %191 = vector.broadcast %cst_113 : f32 to vector<16x128xf32>
    %192 = vector.broadcast %cst_114 : f32 to vector<16x128xf32>
    %193 = arith.select %190, %191, %192 : vector<16x128xi1>, vector<16x128xf32>
    %cst_115 = arith.constant dense<0.000000e+00> : vector<128xf32>
    %194 = vector.multi_reduction <add>, %193, %cst_115 [0] : vector<16x128xf32> to vector<128xf32>
    %195 = vector.shape_cast %194 : vector<128xf32> to vector<1x128xf32>
    %cst_116 = arith.constant 0.116591439 : f32
    %196 = vector.broadcast %cst_116 : f32 to vector<16x128xf32>
    %197 = arith.cmpf ogt, %31, %196 : vector<16x128xf32>
    %cst_117 = arith.constant 1.000000e+00 : f32
    %cst_118 = arith.constant 0.000000e+00 : f32
    %198 = vector.broadcast %cst_117 : f32 to vector<16x128xf32>
    %199 = vector.broadcast %cst_118 : f32 to vector<16x128xf32>
    %200 = arith.select %197, %198, %199 : vector<16x128xi1>, vector<16x128xf32>
    %cst_119 = arith.constant dense<0.000000e+00> : vector<128xf32>
    %201 = vector.multi_reduction <add>, %200, %cst_119 [0] : vector<16x128xf32> to vector<128xf32>
    %202 = vector.shape_cast %201 : vector<128xf32> to vector<1x128xf32>
    %cst_120 = arith.constant 0.215443462 : f32
    %203 = vector.broadcast %cst_120 : f32 to vector<16x128xf32>
    %204 = arith.cmpf ogt, %31, %203 : vector<16x128xf32>
    %cst_121 = arith.constant 1.000000e+00 : f32
    %cst_122 = arith.constant 0.000000e+00 : f32
    %205 = vector.broadcast %cst_121 : f32 to vector<16x128xf32>
    %206 = vector.broadcast %cst_122 : f32 to vector<16x128xf32>
    %207 = arith.select %204, %205, %206 : vector<16x128xi1>, vector<16x128xf32>
    %cst_123 = arith.constant dense<0.000000e+00> : vector<128xf32>
    %208 = vector.multi_reduction <add>, %207, %cst_123 [0] : vector<16x128xf32> to vector<128xf32>
    %209 = vector.shape_cast %208 : vector<128xf32> to vector<1x128xf32>
    %cst_124 = arith.constant 0.398107171 : f32
    %210 = vector.broadcast %cst_124 : f32 to vector<16x128xf32>
    %211 = arith.cmpf ogt, %31, %210 : vector<16x128xf32>
    %cst_125 = arith.constant 1.000000e+00 : f32
    %cst_126 = arith.constant 0.000000e+00 : f32
    %212 = vector.broadcast %cst_125 : f32 to vector<16x128xf32>
    %213 = vector.broadcast %cst_126 : f32 to vector<16x128xf32>
    %214 = arith.select %211, %212, %213 : vector<16x128xi1>, vector<16x128xf32>
    %cst_127 = arith.constant dense<0.000000e+00> : vector<128xf32>
    %215 = vector.multi_reduction <add>, %214, %cst_127 [0] : vector<16x128xf32> to vector<128xf32>
    %216 = vector.shape_cast %215 : vector<128xf32> to vector<1x128xf32>
    %cst_128 = arith.constant 0.735642254 : f32
    %217 = vector.broadcast %cst_128 : f32 to vector<16x128xf32>
    %218 = arith.cmpf ogt, %31, %217 : vector<16x128xf32>
    %cst_129 = arith.constant 1.000000e+00 : f32
    %cst_130 = arith.constant 0.000000e+00 : f32
    %219 = vector.broadcast %cst_129 : f32 to vector<16x128xf32>
    %220 = vector.broadcast %cst_130 : f32 to vector<16x128xf32>
    %221 = arith.select %218, %219, %220 : vector<16x128xi1>, vector<16x128xf32>
    %cst_131 = arith.constant dense<0.000000e+00> : vector<128xf32>
    %222 = vector.multi_reduction <add>, %221, %cst_131 [0] : vector<16x128xf32> to vector<128xf32>
    %223 = vector.shape_cast %222 : vector<128xf32> to vector<1x128xf32>
    %cst_132 = arith.constant 1.3593564 : f32
    %224 = vector.broadcast %cst_132 : f32 to vector<16x128xf32>
    %225 = arith.cmpf ogt, %31, %224 : vector<16x128xf32>
    %cst_133 = arith.constant 1.000000e+00 : f32
    %cst_134 = arith.constant 0.000000e+00 : f32
    %226 = vector.broadcast %cst_133 : f32 to vector<16x128xf32>
    %227 = vector.broadcast %cst_134 : f32 to vector<16x128xf32>
    %228 = arith.select %225, %226, %227 : vector<16x128xi1>, vector<16x128xf32>
    %cst_135 = arith.constant dense<0.000000e+00> : vector<128xf32>
    %229 = vector.multi_reduction <add>, %228, %cst_135 [0] : vector<16x128xf32> to vector<128xf32>
    %230 = vector.shape_cast %229 : vector<128xf32> to vector<1x128xf32>
    %cst_136 = arith.constant 2.51188636 : f32
    %231 = vector.broadcast %cst_136 : f32 to vector<16x128xf32>
    %232 = arith.cmpf ogt, %31, %231 : vector<16x128xf32>
    %cst_137 = arith.constant 1.000000e+00 : f32
    %cst_138 = arith.constant 0.000000e+00 : f32
    %233 = vector.broadcast %cst_137 : f32 to vector<16x128xf32>
    %234 = vector.broadcast %cst_138 : f32 to vector<16x128xf32>
    %235 = arith.select %232, %233, %234 : vector<16x128xi1>, vector<16x128xf32>
    %cst_139 = arith.constant dense<0.000000e+00> : vector<128xf32>
    %236 = vector.multi_reduction <add>, %235, %cst_139 [0] : vector<16x128xf32> to vector<128xf32>
    %237 = vector.shape_cast %236 : vector<128xf32> to vector<1x128xf32>
    %cst_140 = arith.constant 4.64158869 : f32
    %238 = vector.broadcast %cst_140 : f32 to vector<16x128xf32>
    %239 = arith.cmpf ogt, %31, %238 : vector<16x128xf32>
    %cst_141 = arith.constant 1.000000e+00 : f32
    %cst_142 = arith.constant 0.000000e+00 : f32
    %240 = vector.broadcast %cst_141 : f32 to vector<16x128xf32>
    %241 = vector.broadcast %cst_142 : f32 to vector<16x128xf32>
    %242 = arith.select %239, %240, %241 : vector<16x128xi1>, vector<16x128xf32>
    %cst_143 = arith.constant dense<0.000000e+00> : vector<128xf32>
    %243 = vector.multi_reduction <add>, %242, %cst_143 [0] : vector<16x128xf32> to vector<128xf32>
    %244 = vector.shape_cast %243 : vector<128xf32> to vector<1x128xf32>
    %cst_144 = arith.constant 8.57695865 : f32
    %245 = vector.broadcast %cst_144 : f32 to vector<16x128xf32>
    %246 = arith.cmpf ogt, %31, %245 : vector<16x128xf32>
    %cst_145 = arith.constant 1.000000e+00 : f32
    %cst_146 = arith.constant 0.000000e+00 : f32
    %247 = vector.broadcast %cst_145 : f32 to vector<16x128xf32>
    %248 = vector.broadcast %cst_146 : f32 to vector<16x128xf32>
    %249 = arith.select %246, %247, %248 : vector<16x128xi1>, vector<16x128xf32>
    %cst_147 = arith.constant dense<0.000000e+00> : vector<128xf32>
    %250 = vector.multi_reduction <add>, %249, %cst_147 [0] : vector<16x128xf32> to vector<128xf32>
    %251 = vector.shape_cast %250 : vector<128xf32> to vector<1x128xf32>
    %cst_148 = arith.constant 15.8489323 : f32
    %252 = vector.broadcast %cst_148 : f32 to vector<16x128xf32>
    %253 = arith.cmpf ogt, %31, %252 : vector<16x128xf32>
    %cst_149 = arith.constant 1.000000e+00 : f32
    %cst_150 = arith.constant 0.000000e+00 : f32
    %254 = vector.broadcast %cst_149 : f32 to vector<16x128xf32>
    %255 = vector.broadcast %cst_150 : f32 to vector<16x128xf32>
    %256 = arith.select %253, %254, %255 : vector<16x128xi1>, vector<16x128xf32>
    %cst_151 = arith.constant dense<0.000000e+00> : vector<128xf32>
    %257 = vector.multi_reduction <add>, %256, %cst_151 [0] : vector<16x128xf32> to vector<128xf32>
    %258 = vector.shape_cast %257 : vector<128xf32> to vector<1x128xf32>
    %cst_152 = arith.constant 29.2864456 : f32
    %259 = vector.broadcast %cst_152 : f32 to vector<16x128xf32>
    %260 = arith.cmpf ogt, %31, %259 : vector<16x128xf32>
    %cst_153 = arith.constant 1.000000e+00 : f32
    %cst_154 = arith.constant 0.000000e+00 : f32
    %261 = vector.broadcast %cst_153 : f32 to vector<16x128xf32>
    %262 = vector.broadcast %cst_154 : f32 to vector<16x128xf32>
    %263 = arith.select %260, %261, %262 : vector<16x128xi1>, vector<16x128xf32>
    %cst_155 = arith.constant dense<0.000000e+00> : vector<128xf32>
    %264 = vector.multi_reduction <add>, %263, %cst_155 [0] : vector<16x128xf32> to vector<128xf32>
    %265 = vector.shape_cast %264 : vector<128xf32> to vector<1x128xf32>
    %cst_156 = arith.constant 54.116951 : f32
    %266 = vector.broadcast %cst_156 : f32 to vector<16x128xf32>
    %267 = arith.cmpf ogt, %31, %266 : vector<16x128xf32>
    %cst_157 = arith.constant 1.000000e+00 : f32
    %cst_158 = arith.constant 0.000000e+00 : f32
    %268 = vector.broadcast %cst_157 : f32 to vector<16x128xf32>
    %269 = vector.broadcast %cst_158 : f32 to vector<16x128xf32>
    %270 = arith.select %267, %268, %269 : vector<16x128xi1>, vector<16x128xf32>
    %cst_159 = arith.constant dense<0.000000e+00> : vector<128xf32>
    %271 = vector.multi_reduction <add>, %270, %cst_159 [0] : vector<16x128xf32> to vector<128xf32>
    %272 = vector.shape_cast %271 : vector<128xf32> to vector<1x128xf32>
    %cst_160 = arith.constant 1.000000e+02 : f32
    %273 = vector.broadcast %cst_160 : f32 to vector<16x128xf32>
    %274 = arith.cmpf ogt, %31, %273 : vector<16x128xf32>
    %cst_161 = arith.constant 1.000000e+00 : f32
    %cst_162 = arith.constant 0.000000e+00 : f32
    %275 = vector.broadcast %cst_161 : f32 to vector<16x128xf32>
    %276 = vector.broadcast %cst_162 : f32 to vector<16x128xf32>
    %277 = arith.select %274, %275, %276 : vector<16x128xi1>, vector<16x128xf32>
    %cst_163 = arith.constant dense<0.000000e+00> : vector<128xf32>
    %278 = vector.multi_reduction <add>, %277, %cst_163 [0] : vector<16x128xf32> to vector<128xf32>
    %279 = vector.shape_cast %278 : vector<128xf32> to vector<1x128xf32>
    %280 = tpu.concatenate %37, %39, %42, %47, %49, %52, %54, %55, %62, %69, %76, %83, %90, %97, %104, %111 in 0 : vector<1x128xf32>, vector<1x128xf32>, vector<1x128xf32>, vector<1x128xf32>, vector<1x128xf32>, vector<1x128xf32>, vector<1x128xf32>, vector<1x128xf32>, vector<1x128xf32>, vector<1x128xf32>, vector<1x128xf32>, vector<1x128xf32>, vector<1x128xf32>, vector<1x128xf32>, vector<1x128xf32>, vector<1x128xf32> -> vector<16x128xf32>
    %281 = tpu.concatenate %118, %125, %132, %139, %146, %153, %160, %167, %174, %181, %188, %195, %202, %209, %216, %223 in 0 : vector<1x128xf32>, vector<1x128xf32>, vector<1x128xf32>, vector<1x128xf32>, vector<1x128xf32>, vector<1x128xf32>, vector<1x128xf32>, vector<1x128xf32>, vector<1x128xf32>, vector<1x128xf32>, vector<1x128xf32>, vector<1x128xf32>, vector<1x128xf32>, vector<1x128xf32>, vector<1x128xf32>, vector<1x128xf32> -> vector<16x128xf32>
    %282 = tpu.concatenate %230, %237, %244, %251, %258, %265, %272, %279 in 0 : vector<1x128xf32>, vector<1x128xf32>, vector<1x128xf32>, vector<1x128xf32>, vector<1x128xf32>, vector<1x128xf32>, vector<1x128xf32>, vector<1x128xf32> -> vector<8x128xf32>
    %283 = tpu.concatenate %280, %281, %282 in 0 : vector<16x128xf32>, vector<16x128xf32>, vector<8x128xf32> -> vector<40x128xf32>
    %c0_164 = arith.constant 0 : index
    %c0_165 = arith.constant 0 : index
    %c0_166 = arith.constant 0 : index
    %c0_167 = arith.constant 0 : index
    %284 = vector.load %arg8[%c0_164, %c0_165, %c0_166, %c0_167] : memref<1x1x40x128xf32, #tpu.memory_space<vmem>>, vector<1x1x40x128xf32>
    %285 = vector.shape_cast %284 : vector<1x1x40x128xf32> to vector<40x128xf32>
    %286 = vector.shape_cast %283 : vector<40x128xf32> to vector<1x1x40x128xf32>
    tpu.vector_store %arg8[%c0_164, %c0_165, %c0_166, %c0_167], %286 {strides = array<i32>} : memref<1x1x40x128xf32, #tpu.memory_space<vmem>>, vector<1x1x40x128xf32>,
    return
  }
  func.func @transform_0(%arg0: i32, %arg1: i32) -> (i32, i32, i32, i32) {
    %c0_i32 = arith.constant 0 : i32
    %c0_i32_0 = arith.constant 0 : i32
    %c0_i32_1 = arith.constant 0 : i32
    return %arg0, %c0_i32, %arg1, %c0_i32_0 : i32, i32, i32, i32
  }
  func.func @transform_1(%arg0: i32, %arg1: i32) -> (i32, i32, i32) {
    %c0_i32 = arith.constant 0 : i32
    %c0_i32_0 = arith.constant 0 : i32
    return %arg0, %arg1, %c0_i32 : i32, i32, i32
  }
  func.func @transform_2(%arg0: i32, %arg1: i32) -> (i32, i32, i32) {
    %c0_i32 = arith.constant 0 : i32
    %c0_i32_0 = arith.constant 0 : i32
    return %arg0, %arg1, %c0_i32 : i32, i32, i32
  }
  func.func @transform_3(%arg0: i32, %arg1: i32) -> (i32, i32, i32) {
    %c0_i32 = arith.constant 0 : i32
    %c0_i32_0 = arith.constant 0 : i32
    return %arg0, %arg1, %c0_i32 : i32, i32, i32
  }
  func.func @transform_4(%arg0: i32, %arg1: i32) -> (i32, i32, i32) {
    %c0_i32 = arith.constant 0 : i32
    %c0_i32_0 = arith.constant 0 : i32
    return %arg0, %arg1, %c0_i32 : i32, i32, i32
  }
  func.func @transform_5(%arg0: i32, %arg1: i32) -> (i32, i32, i32) {
    %c0_i32 = arith.constant 0 : i32
    %c0_i32_0 = arith.constant 0 : i32
    return %arg0, %arg1, %c0_i32 : i32, i32, i32
  }
  func.func @transform_6(%arg0: i32, %arg1: i32) -> (i32, i32, i32, i32) {
    %c0_i32 = arith.constant 0 : i32
    %c0_i32_0 = arith.constant 0 : i32
    %c0_i32_1 = arith.constant 0 : i32
    return %arg0, %arg1, %c0_i32, %c0_i32_0 : i32, i32, i32, i32
  }
}

</mosaic_0001>

<bundles_post_ra>
// kernel: db_loss.1
= control target key start
LH: loop header
LB: loop body
LE: loop exit
PB: predicated region body
PF: predicated region fallthrough
CT: control target
= control target key end

     0   :  { %s1301_s21 = smov 0   ;;  %s1303_s22 = smov 0   ;;  %s1687_s0 = inlined_call_operand.vmem [shape: f32[2,3,16,128], index: 0, kind: input, shape index: {}]   ;;  %s1688_s1 = inlined_call_operand.vmem [shape: f32[2,16,128], index: 1, kind: input, shape index: {}]   ;;  %s1689_s2 = inlined_call_operand.vmem [shape: f32[2,16,128], index: 2, kind: input, shape index: {}]   ;;  %s1690_s3 = inlined_call_operand.vmem [shape: f32[2,16,128], index: 3, kind: input, shape index: {}]   ;;  %s1691_s4 = inlined_call_operand.vmem [shape: f32[2,16,128], index: 4, kind: input, shape index: {}]   ;;  %s1692_s5 = inlined_call_operand.vmem [shape: f32[2,16,128], index: 5, kind: output, shape index: {0}]   ;;  %s1693_s6 = inlined_call_operand.vmem [shape: f32[2,1,40,128], index: 6, kind: output, shape index: {1}]  }
   0x1   :  { %s1305_s23 = smov 0  }
   0x2 LB: > { %s29_s24 = sadd.s32 1, %s1259_s22  ;;  %p1182_p0 = scmp.ge.s32.totalorder %s1263_s23, 1  ;;  %s1263_s23 = sphi %s1305_s23, %s17_s23   ;;  %s1259_s22 = sphi %s1303_s22, %s1695_s22   ;;  %s1255_s21 = sphi %s1301_s21, %s1694_s21  }
   0x3   : > { %p31_p1 = scmp.ge.s32.totalorder %s29_s24, 2  ;;  %p306_p2 = scmp.lt.s32.totalorder %s1263_s23, 3 }
   0x5   : > { %s1697_s24 = smov (%p31_p1, %s29_s24), 0  ;;  %p307_p3 = pnand %p1182_p0, %p306_p2 }
   0x6   : > { %p390_p4 = scmp.lt.s32.totalorder (!%p307_p3), %s1255_s21, 1  ;;  %vm919_vm0 = vcmask (!%p307_p3), 1040384  }
   0x7   : > { %310 = sbr.rel (%p307_p3) target bundleno = 149 (0x95), region = 40 }
   0xe   : > { %s1699_s21 = smov (!%p390_p4, %s1255_s21), 1 }
   0xf   : > { %s1206_s25 = smul.u32 48, %s1699_s21  ;;  %s1323_s26 = sshll.u32 %s1699_s21, 4 }
  0x10   : > { %s407_s29 = scalar_lea.vmem %s1688_s1, %s1323_s26  ;;  %s417_s8 = scalar_lea.vmem %s1689_s2, %s1323_s26 }
  0x11   : > { %s397_s11 = scalar_lea.vmem %s1687_s0, %s1206_s25  ;;  %s427_s14 = scalar_lea.vmem %s1690_s3, %s1323_s26  ;;  %v1340_v0 = vld [vmem:[%s407_s29] sm:$0xff]  ;;  %v1342_v1 = vld [vmem:[%s407_s29 + $0x8] sm:$0xff] }
  0x12   : > { %v468_v2 = vld [vmem:[%s417_s8] sm:$0xff]  ;;  %s437_s17 = scalar_lea.vmem %s1691_s4, %s1323_s26  ;;  %v459_v4 = vld [vmem:[%s397_s11 + $0x8] sm:$0xff]  ;;  %v1195_v5 = vld [vmem:[%s397_s11 + $0x10] sm:$0xff]  ;;  %v476_v7 = vsub.f32 1.0, %v1340_v0  ;;  %v477_v11 = vsub.f32 1.0, %v1342_v1  ;;  %s447_s20 = scalar_lea.vmem %s1692_s5, %s1323_s26 }
  0x13   : > { %v458_v3 = vld [vmem:[%s397_s11] sm:$0xff]  ;;  %v1349_v6 = vmul.f32 %v468_v2, %v1340_v0  ;;  %v1196_v8 = vld [vmem:[%s397_s11 + $0x18] sm:$0xff]  ;;  %v1198_v10 = vld [vmem:[%s397_s11 + $0x28] sm:$0xff]  ;;  %v487_v13 = vsub.f32 1.0, %v459_v4  ;;  %s1207_s25 = smul.u32 40, %s1699_s21 }
  0x14   : > { %v1197_v9 = vld [vmem:[%s397_s11 + $0x20] sm:$0xff]  ;;  %1233 = vlog2.f32 %v458_v3  ;;  %v486_v12 = vsub.f32 1.0, %v458_v3  ;;  %v469_v14 = vld [vmem:[%s417_s8 + $0x8] sm:$0xff]  ;;  %v1355_v17 = vmul.f32 %v476_v7, %v468_v2 }
  0x15   : > { %v470_v15 = vld [vmem:[%s427_s14] sm:$0xff]  ;;  %v471_v16 = vld [vmem:[%s427_s14 + $0x8] sm:$0xff]  ;;  %1235 = vlog2.f32 %v459_v4  ;;  %v506_v18 = vmul.f32 %v1197_v9, %v468_v2  ;;  %v1358_v21 = vmul.f32 %v469_v14, %v1342_v1  ;;  %v1362_v22 = vmul.f32 %v477_v11, %v469_v14  ;;  %s1624_s27 = scalar_lea.vmem %s1693_s6, %s1207_s25 }
  0x16   : > { %v472_v19 = vld [vmem:[%s437_s17] sm:$0xff]  ;;  %v473_v20 = vld [vmem:[%s437_s17 + $0x8] sm:$0xff]  ;;  %1237 = vlog2.f32 %v486_v12  ;;  %v507_v23 = vmul.f32 %v1198_v10, %v469_v14  ;;  %v531_v24 = vsub.f32 %v1195_v5, %v470_v15  ;;  %v532_v25 = vsub.f32 %v1196_v8, %v471_v16 }
  0x17   : > { %1239 = vlog2.f32 %v487_v13  ;;  %v544_v26 = vadd.f32 %v473_v20, %v472_v19  ;;  %v508_v27 = vadd.f32 %v1358_v21, %v1349_v6  ;;  %v515_v28 = vadd.f32 %v1362_v22, %v1355_v17 }
  0x18   : > { %v551_v29 = vmul.f32 %v506_v18, %v1340_v0  ;;  %v552_v30 = vmul.f32 %v507_v23, %v1342_v1  ;;  %v533_v31 = vand.u32 2147483647, %v531_v24  ;;  %v534_v32 = vand.u32 2147483647, %v532_v25 }
  0x19   : > { %v545_v33 = vrot.slane %v544_v26, 4  ;;  %v560_v34 = vadd.f32 %v507_v23, %v506_v18  ;;  %v509_v35 = vrot.slane %v508_v27, 4  ;;  %v516_v36 = vrot.slane %v515_v28, 4 }
  0x1a   : > { %v553_v37 = vadd.f32 %v552_v30, %v551_v29  ;;  %v535_v38 = vmul.f32 %v533_v31, %v472_v19  ;;  %v536_v39 = vmul.f32 %v534_v32, %v473_v20 }
  0x1b   : > { %v546_v40 = vadd.f32 %v545_v33, %v544_v26  ;;  %v510_v41 = vadd.f32 %v509_v35, %v508_v27  ;;  %v517_v42 = vadd.f32 %v516_v36, %v515_v28  ;;  %v561_v43 = vrot.slane %v560_v34, 4 }
  0x1c   : > { %v537_v44 = vadd.f32 %v536_v39, %v535_v38  ;;  %v554_v45 = vrot.slane %v553_v37, 4 }
  0x1d   : > { %v511_v47 = vrot.slane %v510_v41, 2  ;;  %v518_v48 = vrot.slane %v517_v42, 2  ;;  %v547_v52 = vrot.slane %v546_v40, 2  ;;  %v562_v57 = vadd.f32 %v561_v43, %v560_v34 }
  0x1e   : > { %v1234_v46 = vpop.eup %1233  ;;  %v538_v51 = vrot.slane %v537_v44, 4  ;;  %v555_v62 = vadd.f32 %v554_v45, %v553_v37 }
  0x1f   : > { %v1236_v49 = vpop.eup %1235  ;;  %v481_v50 = vmul.f32 0.6931472, %v1234_v46  ;;  %v512_v55 = vadd.f32 %v511_v47, %v510_v41  ;;  %v519_v56 = vadd.f32 %v518_v48, %v517_v42  ;;  %v548_v10 = vadd.f32 %v547_v52, %v546_v40 }
  0x20   : > { %v1238_v53 = vpop.eup %1237  ;;  %v483_v54 = vmul.f32 0.6931472, %v1236_v49  ;;  %v539_v61 = vadd.f32 %v538_v51, %v537_v44  ;;  %v556_v18 = vrot.slane %v555_v62, 2  ;;  %v563_v27 = vrot.slane %v562_v57, 2 }
  0x21   : > { %v1240_v58 = vpop.eup %1239  ;;  %v484_v59 = vmax.f32 %v481_v50, -100.0  ;;  %v489_v60 = vmul.f32 0.6931472, %v1238_v53  ;;  %v513_v3 = vrot.slane %v512_v55, 1  ;;  %v520_v4 = vrot.slane %v519_v56, 1 }
  0x22   : > { %v485_v63 = vmax.f32 %v483_v54, -100.0  ;;  %v491_v2 = vmul.f32 0.6931472, %v1240_v58  ;;  %v540_v9 = vrot.slane %v539_v61, 2  ;;  %v549_v24 = vrot.slane %v548_v10, 1 }
  0x23   : > { %v492_v5 = vmax.f32 %v489_v60, -100.0  ;;  %v494_v8 = vmul.f32 %v484_v59, %v1340_v0  ;;  %v514_v14 = vadd.f32 %v513_v3, %v512_v55  ;;  %v521_v15 = vadd.f32 %v520_v4, %v519_v56 }
  0x24   : > { %v493_v12 = vmax.f32 %v491_v2, -100.0  ;;  %v495_v13 = vmul.f32 %v485_v63, %v1342_v1  ;;  %v1379_v26 = vadd.f32 %v540_v9, %v539_v61  ;;  %v1381_v29 = vadd.f32 %v556_v18, %v555_v62 }
  0x25   : > { %v496_v16 = vmul.f32 %v492_v5, %v476_v7  ;;  %v1377_v20 = vsel %vm919_vm0, %v514_v14, %v521_v15  ;;  %v1398_v33 = vadd.f32 %v563_v27, %v562_v57 }
  0x26   : > { %v497_v19 = vmul.f32 %v493_v12, %v477_v11  ;;  %v1391_v11 = vadd.f32 %v549_v24, %v548_v10  ;;  %v542_v32 = vrot.slane %v1379_v26, 1  ;;  %v558_v34 = vrot.slane %v1381_v29, 1 }
  0x27   : > { %v498_v23 = vadd.f32 %v496_v16, %v494_v8  ;;  %v565_v41 = vrot.slane %v1398_v33, 1 }
  0x28   : > { %v499_v25 = vadd.f32 %v497_v19, %v495_v13  ;;  %v1430_v10 = vadd.f32 %v542_v32, %v1379_v26 }
  0x29   : > { %v500_v28 = vsub.f32 0.0, %v498_v23  ;;  %v1438_v23 = vadd.f32 %v558_v34, %v1381_v29  ;;  %v1441_v24 = vadd.f32 %v565_v41, %v1398_v33 }
  0x2a   : > { %v501_v0 = vsub.f32 0.0, %v499_v25 }
  0x2b   : > { %v1388_v1 = vmul.f32 %v500_v28, %v1355_v17  ;;  %v522_v7 = vmul.f32 %v500_v28, %v1349_v6  ;;  %v1265_v17 = vmov 0.0  }
  0x2c   : > { %v1394_v30 = vmul.f32 %v501_v0, %v1362_v22  ;;  %v523_v31 = vmul.f32 %v501_v0, %v1358_v21 }
  0x2d   : > { %504 = vst [vmem:[%s447_s20] sm:$0xff] %v1388_v1  ;;  %vm567_vm1 = vcmp.gt.f32.partialorder %v1388_v1, 0.0  ;;  %vm578_vm2 = vcmp.gt.f32.partialorder %v1388_v1, 1e-06  ;;  %vm589_vm3 = vcmp.gt.f32.partialorder %v1388_v1, 1.8478498e-06 }
  0x2e   : > { %505 = vst [vmem:[%s447_s20 + $0x8] sm:$0xff] %v1394_v30  ;;  %v524_v6 = vadd.f32 %v523_v31, %v522_v7  ;;  %vm568_vm4 = vcmp.gt.f32.partialorder %v1394_v30, 0.0  ;;  %v569_v21 = vsel %vm567_vm1, 1.0, %v1265_v17  ;;  %vm579_vm5 = vcmp.gt.f32.partialorder %v1394_v30, 1e-06 }
  0x2f   : > { %v570_v22 = vsel %vm568_vm4, 1.0, %v1265_v17  ;;  %v580_v35 = vsel %vm578_vm2, 1.0, %v1265_v17  ;;  %v581_v36 = vsel %vm579_vm5, 1.0, %v1265_v17  ;;  %vm590_vm6 = vcmp.gt.f32.partialorder %v1394_v30, 1.8478498e-06 }
  0x30   : > { %v525_v37 = vrot.slane %v524_v6, 4  ;;  %v571_v38 = vadd.f32 %v570_v22, %v569_v21  ;;  %v582_v39 = vadd.f32 %v581_v36, %v580_v35  ;;  %v591_v40 = vsel %vm589_vm3, 1.0, %v1265_v17 }
  0x31   : > { %v592_v42 = vsel %vm590_vm6, 1.0, %v1265_v17  ;;  %vm600_vm7 = vcmp.gt.f32.partialorder %v1388_v1, 3.414549e-06  ;;  %vm601_vm8 = vcmp.gt.f32.partialorder %v1394_v30, 3.414549e-06 }
  0x32   : > { %v526_v43 = vadd.f32 %v525_v37, %v524_v6  ;;  %v572_v44 = vrot.slane %v571_v38, 4  ;;  %v583_v45 = vrot.slane %v582_v39, 4  ;;  %v593_v46 = vadd.f32 %v592_v42, %v591_v40 }
  0x33   : > { %v602_v47 = vsel %vm600_vm7, 1.0, %v1265_v17  ;;  %v603_v48 = vsel %vm601_vm8, 1.0, %v1265_v17  ;;  %vm611_vm9 = vcmp.gt.f32.partialorder %v1388_v1, 6.3095736e-06  ;;  %vm612_vm10 = vcmp.gt.f32.partialorder %v1394_v30, 6.3095736e-06 }
  0x34   : > { %v527_v49 = vrot.slane %v526_v43, 2  ;;  %v573_v50 = vadd.f32 %v572_v44, %v571_v38  ;;  %v584_v51 = vadd.f32 %v583_v45, %v582_v39  ;;  %v594_v52 = vrot.slane %v593_v46, 4 }
  0x35   : > { %v604_v53 = vadd.f32 %v603_v48, %v602_v47  ;;  %v613_v54 = vsel %vm611_vm9, 1.0, %v1265_v17  ;;  %v614_v55 = vsel %vm612_vm10, 1.0, %v1265_v17  ;;  %vm622_vm11 = vcmp.gt.f32.partialorder %v1388_v1, 1.1659144e-05 }
  0x36   : > { %v528_v56 = vadd.f32 %v527_v49, %v526_v43  ;;  %v574_v57 = vrot.slane %v573_v50, 2  ;;  %v585_v58 = vrot.slane %v584_v51, 2  ;;  %v595_v59 = vadd.f32 %v594_v52, %v593_v46 }
  0x37   : > { %v605_v60 = vrot.slane %v604_v53, 4  ;;  %v615_v61 = vadd.f32 %v614_v55, %v613_v54  ;;  %vm623_vm12 = vcmp.gt.f32.partialorder %v1394_v30, 1.1659144e-05  ;;  %v624_v62 = vsel %vm622_vm11, 1.0, %v1265_v17 }
  0x38   : > { %v529_v63 = vrot.slane %v528_v56, 1  ;;  %v575_v2 = vadd.f32 %v574_v57, %v573_v50  ;;  %v586_v3 = vadd.f32 %v585_v58, %v584_v51  ;;  %v596_v4 = vrot.slane %v595_v59, 2 }
  0x39   : > { %v606_v5 = vadd.f32 %v605_v60, %v604_v53  ;;  %v616_v8 = vrot.slane %v615_v61, 4  ;;  %v625_v9 = vsel %vm623_vm12, 1.0, %v1265_v17  ;;  %vm633_vm13 = vcmp.gt.f32.partialorder %v1388_v1, 2.1544347e-05 }
  0x3a   : > { %v576_v12 = vrot.slane %v575_v2, 1  ;;  %v587_v13 = vrot.slane %v586_v3, 1  ;;  %v597_v14 = vadd.f32 %v596_v4, %v595_v59  ;;  %v626_v18 = vadd.f32 %v625_v9, %v624_v62 }
  0x3b   : > { %v607_v15 = vrot.slane %v606_v5, 2  ;;  %v617_v16 = vadd.f32 %v616_v8, %v615_v61  ;;  %vm634_vm14 = vcmp.gt.f32.partialorder %v1394_v30, 2.1544347e-05  ;;  %v1433_v19 = vadd.f32 %v529_v63, %v528_v56 }
  0x3c   : > { %v635_v25 = vsel %vm633_vm13, 1.0, %v1265_v17  ;;  %v627_v28 = vrot.slane %v626_v18, 4  ;;  %v636_v0 = vsel %vm634_vm14, 1.0, %v1265_v17  ;;  %v1445_v7 = vadd.f32 %v576_v12, %v575_v2 }
  0x3d   : > { %v608_v26 = vadd.f32 %v607_v15, %v606_v5  ;;  %v618_v27 = vrot.slane %v617_v16, 2  ;;  %v637_v31 = vadd.f32 %v636_v0, %v635_v25  ;;  %vm644_vm15 = vcmp.gt.f32.partialorder %v1388_v1, 3.981072e-05 }
  0x3e   : > { %vm645_vm1 = vcmp.gt.f32.partialorder %v1394_v30, 3.981072e-05  ;;  %v1449_v32 = vadd.f32 %v587_v13, %v586_v3  ;;  %v598_v29 = vrot.slane %v597_v14, 1  ;;  %v628_v34 = vadd.f32 %v627_v28, %v626_v18 }
  0x3f   : > { %v646_v33 = vsel %vm644_vm15, 1.0, %v1265_v17  ;;  %v638_v6 = vrot.slane %v637_v31, 4  ;;  %v647_v21 = vsel %vm645_vm1, 1.0, %v1265_v17  ;;  %vm655_vm2 = vcmp.gt.f32.partialorder %v1388_v1, 7.3564224e-05 }
  0x40   : > { %vm656_vm3 = vcmp.gt.f32.partialorder %v1394_v30, 7.3564224e-05  ;;  %v609_v22 = vrot.slane %v608_v26, 1  ;;  %v619_v35 = vadd.f32 %v618_v27, %v617_v16  ;;  %v629_v36 = vrot.slane %v628_v34, 2 }
  0x41   : > { %v648_v37 = vadd.f32 %v647_v21, %v646_v33  ;;  %v639_v38 = vadd.f32 %v638_v6, %v637_v31  ;;  %v657_v39 = vsel %vm655_vm2, 1.0, %v1265_v17  ;;  %v658_v40 = vsel %vm656_vm3, 1.0, %v1265_v17 }
  0x42   : > { %vm666_vm4 = vcmp.gt.f32.partialorder %v1388_v1, 0.00013593564  ;;  %v1458_v41 = vadd.f32 %v598_v29, %v597_v14  ;;  %v630_v42 = vadd.f32 %v629_v36, %v628_v34  ;;  %v659_v44 = vadd.f32 %v658_v40, %v657_v39 }
  0x43   : > { %v649_v43 = vrot.slane %v648_v37, 4  ;;  %v640_v45 = vrot.slane %v639_v38, 2  ;;  %vm667_vm5 = vcmp.gt.f32.partialorder %v1394_v30, 0.00013593564  ;;  %v668_v46 = vsel %vm666_vm4, 1.0, %v1265_v17 }
  0x44   : > { %vm677_vm6 = vcmp.gt.f32.partialorder %v1388_v1, 0.00025118864  ;;  %v1463_v47 = vadd.f32 %v609_v22, %v608_v26  ;;  %v660_v49 = vrot.slane %v659_v44, 4  ;;  %v669_v50 = vsel %vm667_vm5, 1.0, %v1265_v17 }
  0x45   : > { %v650_v48 = vadd.f32 %v649_v43, %v648_v37  ;;  %v620_v51 = vrot.slane %v619_v35, 1  ;;  %v670_v52 = vadd.f32 %v669_v50, %v668_v46  ;;  %vm678_vm7 = vcmp.gt.f32.partialorder %v1394_v30, 0.00025118864 }
  0x46   : > { %v679_v53 = vsel %vm677_vm6, 1.0, %v1265_v17  ;;  %v641_v54 = vadd.f32 %v640_v45, %v639_v38  ;;  %v661_v56 = vadd.f32 %v660_v49, %v659_v44  ;;  %v680_v57 = vsel %vm678_vm7, 1.0, %v1265_v17 }
  0x47   : > { %v651_v55 = vrot.slane %v650_v48, 2  ;;  %v631_v58 = vrot.slane %v630_v42, 1  ;;  %v671_v59 = vrot.slane %v670_v52, 4  ;;  %v681_v60 = vadd.f32 %v680_v57, %v679_v53 }
  0x48   : > { %vm688_vm8 = vcmp.gt.f32.partialorder %v1388_v1, 0.0004641589  ;;  %v662_v62 = vrot.slane %v661_v56, 2  ;;  %vm689_vm9 = vcmp.gt.f32.partialorder %v1394_v30, 0.0004641589  ;;  %v1472_v2 = vadd.f32 %v620_v51, %v619_v35 }
  0x49   : > { %v652_v61 = vadd.f32 %v651_v55, %v650_v48  ;;  %v690_v63 = vsel %vm688_vm8, 1.0, %v1265_v17  ;;  %v672_v3 = vadd.f32 %v671_v59, %v670_v52  ;;  %v682_v4 = vrot.slane %v681_v60, 4 }
  0x4a   : > { %v691_v5 = vsel %vm689_vm9, 1.0, %v1265_v17  ;;  %v642_v8 = vrot.slane %v641_v54, 1  ;;  %v663_v9 = vadd.f32 %v662_v62, %v661_v56  ;;  %vm699_vm10 = vcmp.gt.f32.partialorder %v1388_v1, 0.0008576959 }
  0x4b   : > { %v692_v12 = vadd.f32 %v691_v5, %v690_v63  ;;  %v673_v13 = vrot.slane %v672_v3, 2  ;;  %v683_v14 = vadd.f32 %v682_v4, %v681_v60  ;;  %vm700_vm11 = vcmp.gt.f32.partialorder %v1394_v30, 0.0008576959 }
  0x4c   : > { %v701_v15 = vsel %vm699_vm10, 1.0, %v1265_v17  ;;  %v1478_v16 = vadd.f32 %v631_v58, %v630_v42  ;;  %v653_v18 = vrot.slane %v652_v61, 1  ;;  %v702_v26 = vsel %vm700_vm11, 1.0, %v1265_v17 }
  0x4d   : > { %v693_v25 = vrot.slane %v692_v12, 4  ;;  %v664_v27 = vrot.slane %v663_v9, 1  ;;  %v674_v28 = vadd.f32 %v673_v13, %v672_v3  ;;  %v703_v0 = vadd.f32 %v702_v26, %v701_v15 }
  0x4e   : > { %vm710_vm12 = vcmp.gt.f32.partialorder %v1388_v1, 0.0015848932  ;;  %v684_v31 = vrot.slane %v683_v14, 2  ;;  %vm711_vm13 = vcmp.gt.f32.partialorder %v1394_v30, 0.0015848932  ;;  %v1484_v33 = vadd.f32 %v642_v8, %v641_v54 }
  0x4f   : > { %v694_v29 = vadd.f32 %v693_v25, %v692_v12  ;;  %v712_v34 = vsel %vm710_vm12, 1.0, %v1265_v17  ;;  %v675_v6 = vrot.slane %v674_v28, 1  ;;  %v704_v21 = vrot.slane %v703_v0, 4 }
  0x50   : > { %v713_v22 = vsel %vm711_vm13, 1.0, %v1265_v17  ;;  %vm721_vm14 = vcmp.gt.f32.partialorder %v1388_v1, 0.0029286447  ;;  %vm722_vm15 = vcmp.gt.f32.partialorder %v1394_v30, 0.0029286447  ;;  %v1489_v37 = vadd.f32 %v653_v18, %v652_v61 }
  0x51   : > { %v695_v35 = vrot.slane %v694_v29, 2  ;;  %v714_v36 = vadd.f32 %v713_v22, %v712_v34  ;;  %v1491_v38 = vadd.f32 %v664_v27, %v663_v9  ;;  %v705_v39 = vadd.f32 %v704_v21, %v703_v0 }
  0x52   : > { %v723_v40 = vsel %vm721_vm14, 1.0, %v1265_v17  ;;  %v685_v42 = vadd.f32 %v684_v31, %v683_v14  ;;  %v724_v44 = vsel %vm722_vm15, 1.0, %v1265_v17  ;;  %vm732_vm1 = vcmp.gt.f32.partialorder %v1388_v1, 0.005411695 }
  0x53   : > { %v715_v43 = vrot.slane %v714_v36, 4  ;;  %v696_v45 = vadd.f32 %v695_v35, %v694_v29  ;;  %v706_v46 = vrot.slane %v705_v39, 2  ;;  %v725_v48 = vadd.f32 %v724_v44, %v723_v40 }
  0x54   : > { %vm733_vm2 = vcmp.gt.f32.partialorder %v1394_v30, 0.005411695  ;;  %v1497_v49 = vadd.f32 %v675_v6, %v674_v28  ;;  %v734_v51 = vsel %vm732_vm1, 1.0, %v1265_v17  ;;  %vm743_vm3 = vcmp.gt.f32.partialorder %v1388_v1, 0.01 }
  0x55   : > { %v716_v50 = vadd.f32 %v715_v43, %v714_v36  ;;  %v735_v52 = vsel %vm733_vm2, 1.0, %v1265_v17  ;;  %v707_v53 = vadd.f32 %v706_v46, %v705_v39  ;;  %v726_v54 = vrot.slane %v725_v48, 4 }
  0x56   : > { %v736_v55 = vadd.f32 %v735_v52, %v734_v51  ;;  %v686_v56 = vrot.slane %v685_v42, 1  ;;  %vm744_vm4 = vcmp.gt.f32.partialorder %v1394_v30, 0.01  ;;  %v745_v58 = vsel %vm743_vm3, 1.0, %v1265_v17 }
  0x57   : > { %v717_v57 = vrot.slane %v716_v50, 2  ;;  %v697_v59 = vrot.slane %v696_v45, 1  ;;  %v727_v60 = vadd.f32 %v726_v54, %v725_v48  ;;  %v746_v62 = vsel %vm744_vm4, 1.0, %v1265_v17 }
  0x58   : > { %v737_v61 = vrot.slane %v736_v55, 4  ;;  %vm908_vm5 = vcmp.gt.f32.partialorder %v1388_v1, 100.0  ;;  %v747_v3 = vadd.f32 %v746_v62, %v745_v58  ;;  %vm754_vm6 = vcmp.gt.f32.partialorder %v1388_v1, 0.018478498 }
  0x59   : > { %v718_v63 = vadd.f32 %v717_v57, %v716_v50  ;;  %vm755_vm7 = vcmp.gt.f32.partialorder %v1394_v30, 0.018478498  ;;  %v708_v4 = vrot.slane %v707_v53, 1  ;;  %v728_v5 = vrot.slane %v727_v60, 2 }
  0x5a   : > { %v738_v8 = vadd.f32 %v737_v61, %v736_v55  ;;  %v756_v9 = vsel %vm754_vm6, 1.0, %v1265_v17  ;;  %v748_v13 = vrot.slane %v747_v3, 4  ;;  %v757_v14 = vsel %vm755_vm7, 1.0, %v1265_v17 }
  0x5b   : > { %v719_v12 = vrot.slane %v718_v63, 1  ;;  %vm765_vm8 = vcmp.gt.f32.partialorder %v1388_v1, 0.03414549  ;;  %v729_v15 = vadd.f32 %v728_v5, %v727_v60  ;;  %v758_v25 = vadd.f32 %v757_v14, %v756_v9 }
  0x5c   : > { %v739_v18 = vrot.slane %v738_v8, 2  ;;  %vm766_vm9 = vcmp.gt.f32.partialorder %v1394_v30, 0.03414549  ;;  %v1512_v26 = vadd.f32 %v686_v56, %v685_v42  ;;  %v749_v27 = vadd.f32 %v748_v13, %v747_v3 }
  0x5d   : > { %v767_v28 = vsel %vm765_vm8, 1.0, %v1265_v17  ;;  %v768_v0 = vsel %vm766_vm9, 1.0, %v1265_v17  ;;  %v1516_v31 = vadd.f32 %v697_v59, %v696_v45  ;;  %v759_v34 = vrot.slane %v758_v25, 4 }
  0x5e   : > { %v740_v29 = vadd.f32 %v739_v18, %v738_v8  ;;  %v769_v6 = vadd.f32 %v768_v0, %v767_v28  ;;  %v1518_v21 = vadd.f32 %v708_v4, %v707_v53  ;;  %v750_v22 = vrot.slane %v749_v27, 2 }
  0x5f   : > { %vm776_vm10 = vcmp.gt.f32.partialorder %v1388_v1, 0.06309573  ;;  %vm777_vm11 = vcmp.gt.f32.partialorder %v1394_v30, 0.06309573  ;;  %v1522_v35 = vadd.f32 %v719_v12, %v718_v63  ;;  %v730_v36 = vrot.slane %v729_v15, 1 }
  0x60   : > { %v760_v39 = vadd.f32 %v759_v34, %v758_v25  ;;  %v770_v40 = vrot.slane %v769_v6, 4  ;;  %v751_v42 = vadd.f32 %v750_v22, %v749_v27  ;;  %v778_v43 = vsel %vm776_vm10, 1.0, %v1265_v17 }
  0x61   : > { %v779_v44 = vsel %vm777_vm11, 1.0, %v1265_v17  ;;  %vm787_vm12 = vcmp.gt.f32.partialorder %v1388_v1, 0.11659144  ;;  %v741_v45 = vrot.slane %v740_v29, 1  ;;  %vm788_vm13 = vcmp.gt.f32.partialorder %v1394_v30, 0.11659144 }
  0x62   : > { %v761_v46 = vrot.slane %v760_v39, 2  ;;  %v771_v48 = vadd.f32 %v770_v40, %v769_v6  ;;  %v780_v50 = vadd.f32 %v779_v44, %v778_v43  ;;  %v789_v51 = vsel %vm787_vm12, 1.0, %v1265_v17 }
  0x63   : > { %vm798_vm14 = vcmp.gt.f32.partialorder %v1388_v1, 0.21544346  ;;  %v1533_v52 = vsel %vm908_vm5, 1.0, %v1265_v17  ;;  %v752_v53 = vrot.slane %v751_v42, 1  ;;  %v790_v56 = vsel %vm788_vm13, 1.0, %v1265_v17 }
  0x64   : > { %v772_v54 = vrot.slane %v771_v48, 2  ;;  %v781_v55 = vrot.slane %v780_v50, 4  ;;  %v1536_v57 = vadd.f32 %v730_v36, %v729_v15  ;;  %v791_v58 = vadd.f32 %v790_v56, %v789_v51 }
  0x65   : > { %vm799_vm15 = vcmp.gt.f32.partialorder %v1394_v30, 0.21544346  ;;  %v800_v59 = vsel %vm798_vm14, 1.0, %v1265_v17  ;;  %v1540_v60 = vadd.f32 %v741_v45, %v740_v29  ;;  %v762_v61 = vadd.f32 %v761_v46, %v760_v39 }
  0x66   : > { %v782_v62 = vadd.f32 %v781_v55, %v780_v50  ;;  %v801_v63 = vsel %vm799_vm15, 1.0, %v1265_v17  ;;  %v792_v3 = vrot.slane %v791_v58, 4  ;;  %vm809_vm1 = vcmp.gt.f32.partialorder %v1388_v1, 0.39810717 }
  0x67   : > { %v802_v4 = vadd.f32 %v801_v63, %v800_v59  ;;  %vm810_vm2 = vcmp.gt.f32.partialorder %v1394_v30, 0.39810717  ;;  %v1545_v5 = vadd.f32 %v752_v53, %v751_v42  ;;  %v773_v8 = vadd.f32 %v772_v54, %v771_v48 }
  0x68   : > { %v783_v9 = vrot.slane %v782_v62, 2  ;;  %v811_v12 = vsel %vm809_vm1, 1.0, %v1265_v17  ;;  %v793_v13 = vadd.f32 %v792_v3, %v791_v58  ;;  %v812_v15 = vsel %vm810_vm2, 1.0, %v1265_v17 }
  0x69   : > { %v803_v14 = vrot.slane %v802_v4, 4  ;;  %vm820_vm3 = vcmp.gt.f32.partialorder %v1388_v1, 0.73564225  ;;  %v763_v18 = vrot.slane %v762_v61, 1  ;;  %v813_v27 = vadd.f32 %v812_v15, %v811_v12 }
  0x6a   : > { %v784_v25 = vadd.f32 %v783_v9, %v782_v62  ;;  %vm821_vm4 = vcmp.gt.f32.partialorder %v1394_v30, 0.73564225  ;;  %v794_v28 = vrot.slane %v793_v13, 2  ;;  %v822_v29 = vsel %vm820_vm3, 1.0, %v1265_v17 }
  0x6b   : > { %v804_v0 = vadd.f32 %v803_v14, %v802_v4  ;;  %v823_v34 = vsel %vm821_vm4, 1.0, %v1265_v17  ;;  %v774_v6 = vrot.slane %v773_v8, 1  ;;  %v814_v22 = vrot.slane %v813_v27, 4 }
  0x6c   : > { %v824_v36 = vadd.f32 %v823_v34, %v822_v29  ;;  %vm831_vm5 = vcmp.gt.f32.partialorder %v1388_v1, 1.3593564  ;;  %v795_v39 = vadd.f32 %v794_v28, %v793_v13  ;;  %vm832_vm6 = vcmp.gt.f32.partialorder %v1394_v30, 1.3593564 }
  0x6d   : > { %v805_v40 = vrot.slane %v804_v0, 2  ;;  %v833_v42 = vsel %vm831_vm5, 1.0, %v1265_v17  ;;  %v1556_v43 = vadd.f32 %v763_v18, %v762_v61  ;;  %v815_v44 = vadd.f32 %v814_v22, %v813_v27 }
  0x6e   : > { %v825_v45 = vrot.slane %v824_v36, 4  ;;  %v834_v46 = vsel %vm832_vm6, 1.0, %v1265_v17  ;;  %v785_v48 = vrot.slane %v784_v25, 1  ;;  %vm842_vm7 = vcmp.gt.f32.partialorder %v1388_v1, 2.5118864 }
  0x6f   : > { %v806_v50 = vadd.f32 %v805_v40, %v804_v0  ;;  %v835_v51 = vadd.f32 %v834_v46, %v833_v42  ;;  %v816_v53 = vrot.slane %v815_v44, 2  ;;  %vm843_vm8 = vcmp.gt.f32.partialorder %v1394_v30, 2.5118864 }
  0x70   : > { %v826_v54 = vadd.f32 %v825_v45, %v824_v36  ;;  %v844_v55 = vsel %vm842_vm7, 1.0, %v1265_v17  ;;  %v1562_v56 = vadd.f32 %v774_v6, %v773_v8  ;;  %v796_v58 = vrot.slane %v795_v39, 1 }
  0x71   : > { %v836_v59 = vrot.slane %v835_v51, 4  ;;  %v845_v61 = vsel %vm843_vm8, 1.0, %v1265_v17  ;;  %v807_v62 = vrot.slane %v806_v50, 1  ;;  %v817_v63 = vadd.f32 %v816_v53, %v815_v44 }
  0x72   : > { %v846_v3 = vadd.f32 %v845_v61, %v844_v55  ;;  %vm853_vm9 = vcmp.gt.f32.partialorder %v1388_v1, 4.6415887  ;;  %v827_v4 = vrot.slane %v826_v54, 2  ;;  %vm854_vm10 = vcmp.gt.f32.partialorder %v1394_v30, 4.6415887 }
  0x73   : > { %v837_v9 = vadd.f32 %v836_v59, %v835_v51  ;;  %v855_v12 = vsel %vm853_vm9, 1.0, %v1265_v17  ;;  %v1568_v13 = vadd.f32 %v785_v48, %v784_v25  ;;  %v818_v14 = vrot.slane %v817_v63, 1 }
  0x74   : > { %v847_v8 = vrot.slane %v846_v3, 4  ;;  %v856_v15 = vsel %vm854_vm10, 1.0, %v1265_v17  ;;  %vm909_vm11 = vcmp.gt.f32.partialorder %v1394_v30, 100.0  ;;  %vm864_vm12 = vcmp.gt.f32.partialorder %v1388_v1, 8.576959 }
  0x75   : > { %v838_v18 = vrot.slane %v837_v9, 2  ;;  %v857_v27 = vadd.f32 %v856_v15, %v855_v12  ;;  %vm865_vm13 = vcmp.gt.f32.partialorder %v1394_v30, 8.576959  ;;  %v1574_v28 = vadd.f32 %v796_v58, %v795_v39 }
  0x76   : > { %v1576_v0 = vadd.f32 %v807_v62, %v806_v50  ;;  %v848_v29 = vadd.f32 %v847_v8, %v846_v3  ;;  %v866_v25 = vsel %vm864_vm12, 1.0, %v1265_v17  ;;  %vm921_vm14 = vcmask 1041408  }
  0x77   : > { %v1579_v34 = vadd.f32 %v827_v4, %v826_v54  ;;  %v858_v6 = vrot.slane %v857_v27, 4  ;;  %v867_v22 = vsel %vm865_vm13, 1.0, %v1265_v17  ;;  %vm875_vm15 = vcmp.gt.f32.partialorder %v1388_v1, 15.848932 }
  0x78   : > { %v839_v36 = vadd.f32 %v838_v18, %v837_v9  ;;  %v849_v40 = vrot.slane %v848_v29, 2  ;;  %v868_v42 = vadd.f32 %v867_v22, %v866_v25  ;;  %vm876_vm1 = vcmp.gt.f32.partialorder %v1394_v30, 15.848932 }
  0x79   : > { %vm923_vm2 = vcmask 1042432   ;;  %v1584_v39 = vadd.f32 %v818_v14, %v817_v63  ;;  %v859_v44 = vadd.f32 %v858_v6, %v857_v27  ;;  %v877_v45 = vsel %vm875_vm15, 1.0, %v1265_v17 }
  0x7a   : > { %v878_v46 = vsel %vm876_vm1, 1.0, %v1265_v17  ;;  %v850_v48 = vadd.f32 %v849_v40, %v848_v29  ;;  %v869_v50 = vrot.slane %v868_v42, 4  ;;  %vm886_vm3 = vcmp.gt.f32.partialorder %v1388_v1, 29.286446 }
  0x7b   : > { %v879_v51 = vadd.f32 %v878_v46, %v877_v45  ;;  %vm925_vm4 = vcmask 1043456   ;;  %v829_v53 = vrot.slane %v1579_v34, 1  ;;  %v860_v54 = vrot.slane %v859_v44, 2 }
  0x7c   : > { %vm887_vm5 = vcmp.gt.f32.partialorder %v1394_v30, 29.286446  ;;  %v888_v55 = vsel %vm886_vm3, 1.0, %v1265_v17  ;;  %vm927_vm6 = vcmask 1044480   ;;  %v840_v58 = vrot.slane %v839_v36, 1 }
  0x7d   : > { %v870_v59 = vadd.f32 %v869_v50, %v868_v42  ;;  %v880_v61 = vrot.slane %v879_v51, 4  ;;  %v889_v62 = vsel %vm887_vm5, 1.0, %v1265_v17  ;;  %vm929_vm7 = vcmask 1045504  }
  0x7e   : > { %v861_v63 = vadd.f32 %v860_v54, %v859_v44  ;;  %v890_v3 = vadd.f32 %v889_v62, %v888_v55  ;;  %vm897_vm8 = vcmp.gt.f32.partialorder %v1388_v1, 54.11695  ;;  %vm898_vm9 = vcmp.gt.f32.partialorder %v1394_v30, 54.11695 }
  0x7f   : > { %vm931_vm10 = vcmask 1046528   ;;  %v851_v4 = vrot.slane %v850_v48, 1  ;;  %v871_v9 = vrot.slane %v870_v59, 2  ;;  %v881_v12 = vadd.f32 %v880_v61, %v879_v51 }
  0x80   : > { %v899_v14 = vsel %vm897_vm8, 1.0, %v1265_v17  ;;  %v862_v8 = vrot.slane %v861_v63, 1  ;;  %v891_v15 = vrot.slane %v890_v3, 4  ;;  %v900_v18 = vsel %vm898_vm9, 1.0, %v1265_v17 }
  0x81   : > { %v911_v27 = vsel %vm909_vm11, 1.0, %v1265_v17  ;;  %v872_v29 = vadd.f32 %v871_v9, %v870_v59  ;;  %v882_v25 = vrot.slane %v881_v12, 2  ;;  %v901_v1 = vadd.f32 %v900_v18, %v899_v14 }
  0x82   : > { %v912_v6 = vadd.f32 %v911_v27, %v1533_v52  ;;  %v841_v22 = vadd.f32 %v840_v58, %v839_v36  ;;  %v892_v40 = vadd.f32 %v891_v15, %v890_v3  ;;  %v922_v42 = vsel %vm921_vm14, %v1377_v20, %v1433_v19 }
  0x83   : > { %v933_v44 = vsel %vm919_vm0, %v1445_v7, %v1449_v32  ;;  %v852_v45 = vadd.f32 %v851_v4, %v850_v48  ;;  %v883_v46 = vadd.f32 %v882_v25, %v881_v12  ;;  %v902_v30 = vrot.slane %v901_v1, 4 }
  0x84   : > { %v913_v17 = vrot.slane %v912_v6, 4  ;;  %v893_v50 = vrot.slane %v892_v40, 2  ;;  %v924_v51 = vsel %vm923_vm2, %v922_v42, %v1430_v10  ;;  %v934_v52 = vsel %vm921_vm14, %v933_v44, %v1458_v41 }
  0x85   : > { %v940_v20 = vsel %vm919_vm0, %v1491_v38, %v1497_v49  ;;  %v863_v19 = vadd.f32 %v862_v8, %v861_v63  ;;  %v873_v36 = vrot.slane %v872_v29, 1  ;;  %v903_v54 = vadd.f32 %v902_v30, %v901_v1 }
  0x86   : > { %v914_v7 = vadd.f32 %v913_v17, %v912_v6  ;;  %v894_v32 = vadd.f32 %v893_v50, %v892_v40  ;;  %v926_v48 = vsel %vm925_vm4, %v924_v51, %v1391_v11  ;;  %v935_v55 = vsel %vm923_vm2, %v934_v52, %v1463_v47 }
  0x87   : > { %v941_v10 = vsel %vm921_vm14, %v940_v20, %v1512_v26  ;;  %v884_v41 = vrot.slane %v883_v46, 1  ;;  %v904_v38 = vrot.slane %v903_v54, 2  ;;  %v928_v58 = vsel %vm927_vm6, %v926_v48, %v1438_v23 }
  0x88   : > { %v915_v49 = vrot.slane %v914_v7, 2  ;;  %v895_v59 = vrot.slane %v894_v32, 1  ;;  %v930_v11 = vsel %vm929_vm7, %v928_v58, %v1441_v24  ;;  %v936_v47 = vsel %vm925_vm4, %v935_v55, %v1472_v2 }
  0x89   : > { %v942_v26 = vsel %vm923_vm2, %v941_v10, %v1516_v31  ;;  %v905_v61 = vadd.f32 %v904_v38, %v903_v54  ;;  %v932_v63 = vsel %vm931_vm10, %v930_v11, 0.0  ;;  %v937_v3 = vsel %vm927_vm6, %v936_v47, %v1478_v16 }
  0x8a   : > { %v916_v62 = vadd.f32 %v915_v49, %v914_v7  ;;  %v874_v4 = vadd.f32 %v873_v36, %v872_v29  ;;  %v938_v23 = vsel %vm929_vm7, %v937_v3, %v1484_v33  ;;  %v943_v24 = vsel %vm925_vm4, %v942_v26, %v1518_v21  ;;  %961 = vst [vmem:[%s1624_s27] sm:$0xff] %v932_v63 }
  0x8b   : > { %v947_v2 = vsel %vm919_vm0, %v1545_v5, %v1556_v43  ;;  %v906_v31 = vrot.slane %v905_v61, 1  ;;  %v939_v12 = vsel %vm931_vm10, %v938_v23, %v1489_v37  ;;  %v944_v16 = vsel %vm927_vm6, %v943_v24, %v1522_v35 }
  0x8c   : > { %v917_v9 = vrot.slane %v916_v62, 1  ;;  %v885_v14 = vadd.f32 %v884_v41, %v883_v46  ;;  %v945_v33 = vsel %vm929_vm7, %v944_v16, %v1536_v57  ;;  %v948_v21 = vsel %vm921_vm14, %v947_v2, %v1562_v56  ;;  %962 = vst [vmem:[%s1624_s27 + $0x8] sm:$0xff] %v939_v12 }
  0x8d   : > { %v954_v8 = vsel %vm919_vm0, %v841_v22, %v852_v45  ;;  %v830_v5 = vadd.f32 %v829_v53, %v1579_v34  ;;  %v896_v43 = vadd.f32 %v895_v59, %v894_v32  ;;  %v946_v37 = vsel %vm931_vm10, %v945_v33, %v1540_v60 }
  0x8e   : > { %v949_v35 = vsel %vm923_vm2, %v948_v21, %v1568_v13  ;;  %v907_v57 = vadd.f32 %v906_v31, %v905_v61  ;;  %v955_v15 = vsel %vm921_vm14, %v954_v8, %v863_v19  ;;  %963 = vst [vmem:[%s1624_s27 + $0x10] sm:$0xff] %v946_v37  ;;  %v918_v18 = vadd.f32 %v917_v9, %v916_v62 }
  0x8f   : > { %v950_v56 = vsel %vm925_vm4, %v949_v35, %v1574_v28  ;;  %v956_v53 = vsel %vm923_vm2, %v955_v15, %v874_v4 }
  0x90   : > { %v951_v34 = vsel %vm927_vm6, %v950_v56, %v1576_v0  ;;  %v957_v27 = vsel %vm925_vm4, %v956_v53, %v885_v14 }
  0x91   : > { %v952_v60 = vsel %vm929_vm7, %v951_v34, %v1584_v39  ;;  %v958_v29 = vsel %vm927_vm6, %v957_v27, %v896_v43 }
  0x92   : > { %v953_v13 = vsel %vm931_vm10, %v952_v60, %v830_v5  ;;  %v959_v28 = vsel %vm929_vm7, %v958_v29, %v907_v57 }
  0x93   : > { %964 = vst [vmem:[%s1624_s27 + $0x18] sm:$0xff] %v953_v13  ;;  %v960_v25 = vsel %vm931_vm10, %v959_v28, %v918_v18 }
  0x94   : > { %965 = vst [vmem:[%s1624_s27 + $0x20] sm:$0xff] %v960_v25 }
  0x95 PF: > { %s17_s23 = sadd.s32 1, %s1263_s23   ;;  %s1694_s21 = smov %s1259_s22 }
  0x96   : > { %p14_p5 = scmp.ge.s32.totalorder %s17_s23, 4   ;;  %s1695_s22 = smov %s1697_s24 }
  0x98   :  { %16 = sbr.rel (!%p14_p5) target bundleno = 2 (0x2), region = 96 }

</bundles_post_ra>
